<compile_context>
chip_gen: v6e
topology: v6e:2x2x1
jax: 0.10.0
libtpu: 0.0.40
codegen_flags: <defaults>
</compile_context>

<pallas_src>
import jax
import jax.numpy as jnp
from jax import lax
from jax.experimental import pallas as pl
from jax.experimental.pallas import tpu as pltpu

_LANE = 128


def _round_up(n, m):
    return ((n + m - 1) // m) * m


def _cdiv(a, b):
    return -(-a // b)


def _leaky_relu(x, slope=0.2):
    return jnp.where(x > 0, x, slope * x)


def discriminator_kernel(
    x_ref,
    w1_ref, b1_ref,
    w2_ref, b2_ref,
    w3_ref, b3_ref,
    w4_ref, b4_ref,
    out_ref,
):
    """Fused 4-layer MLP: 3 x (Linear + LeakyReLU(0.2)) + final Linear(H, 1)."""
    compute_dtype = x_ref.dtype

    # Layers 1-3: bf16 MXU matmul, f32 accumulate; bias/activation in f32.
    h1 = jnp.dot(x_ref[...], w1_ref[...], preferred_element_type=jnp.float32)
    h1 = _leaky_relu(h1 + b1_ref[...])

    h2 = jnp.dot(h1.astype(compute_dtype), w2_ref[...],
                 preferred_element_type=jnp.float32)
    h2 = _leaky_relu(h2 + b2_ref[...])

    h3 = jnp.dot(h2.astype(compute_dtype), w3_ref[...],
                 preferred_element_type=jnp.float32)
    h3 = _leaky_relu(h3 + b3_ref[...])          # stays f32 for the last layer

    # Layer 4 (Linear(H, 1)): contract w4 [1, Hp] with h3 [bt, Hp] on Hp so the
    # MXU does the reduction and the result lands lane-dense as [1, bt]
    # (no cross-lane relayout in the epilogue, no 1-lane masked store).
    logits = lax.dot_general(
        w4_ref[...], h3,
        dimension_numbers=(((1,), (1,)), ((), ())),
        preferred_element_type=jnp.float32)      # [1, bt]
    out_ref[0] = (logits + b4_ref[...]).astype(out_ref.dtype)


def _vmem_estimate_bytes(bt, d, h4, h2, h1, cd_bytes):
    """Rough per-step VMEM footprint for the fused kernel at batch tile bt."""
    x_bytes = 2 * bt * d * cd_bytes                   # double-buffered x tile
    out_bytes = 2 * bt * 4                            # double-buffered [1, bt] out
    w_bytes = (d * h4 + h4 * h2 + h2 * h1) * cd_bytes + h1 * 4
    b_bytes = (h4 + h2 + h1 + 1) * 4
    # f32 activations h1/h2/h3 plus the bf16 copies fed back to the MXU.
    act_bytes = bt * ((h4 + h2 + h1) * 4 + (h4 + h2) * cd_bytes)
    return x_bytes + out_bytes + w_bytes + b_bytes + act_bytes


def _pick_batch_tiling(B, target_bt, fits):
    """128-aligned batch tile + tile count.

    Tile count is kept even when > 1 (so v7x's two TensorCores split the
    'parallel' axis evenly) by splitting the tile rather than padding a whole
    extra tile; padding waste is bounded by ~128 rows per tile.
    """
    n = max(1, _cdiv(B, max(_LANE, target_bt)))
    if n > 1 and n % 2:
        n += 1
    bt = _round_up(_cdiv(B, n), _LANE)
    while bt > _LANE and not fits(bt):          # shrink until the VMEM budget fits
        bt -= _LANE
    num_tiles = _cdiv(B, bt)
    if num_tiles > 1 and num_tiles % 2:
        num_tiles += 1
        bt = _round_up(_cdiv(B, num_tiles), _LANE)   # smaller -> still fits
    return bt, num_tiles


def discriminator_forward(x, params, *, batch_tile=2048,
                          compute_dtype=jnp.bfloat16):
    """Run the fused discriminator kernel.

    x: [B, im_dim]
    params: dict with w1..w4 stored as [in_features, out_features] (transposed
            vs. PyTorch nn.Linear) and b1..b4 as [1, out_features].
    Returns [B, 1] float32 logits (same semantics as the PyTorch module).
    """
    B, im_dim = x.shape
    h4 = params["w1"].shape[1]
    h2 = params["w2"].shape[1]
    h1 = params["w3"].shape[1]
    cd_bytes = jnp.dtype(compute_dtype).itemsize

    # Lane-align every width with zero padding (zeros propagate exactly
    # through LeakyReLU and zero weight rows -> no numerical change).
    d_pad = _round_up(im_dim, _LANE)
    h4p, h2p, h1p = (_round_up(v, _LANE) for v in (h4, h2, h1))

    # VMEM-aware batch-tile selection + explicit scoped-VMEM limit
    # (v7x: 64 MiB physical; v5e/v6e: 128 MiB; default scoped limits are lower).
    try:
        vmem_cap = int(pltpu.get_tpu_info().vmem_capacity_bytes)
    except Exception:
        vmem_cap = 64 << 20                     # conservative: v7x per-core VMEM
    vmem_limit = int(min(vmem_cap * 3 // 4, 96 << 20))
    vmem_budget = int(vmem_limit * 0.8)

    def fits(bt):
        return _vmem_estimate_bytes(bt, d_pad, h4p, h2p, h1p,
                                    cd_bytes) <= vmem_budget

    bt, num_tiles = _pick_batch_tiling(B, batch_tile, fits)
    padded_B = num_tiles * bt

    # Inputs / weights in compute dtype, zero-padded to lane-aligned shapes.
    x_c = jnp.pad(x.astype(compute_dtype),
                  ((0, padded_B - B), (0, d_pad - im_dim)))

    def pad2(a, rows, cols, dt):
        a = a.astype(dt)
        return jnp.pad(a, ((0, rows - a.shape[0]), (0, cols - a.shape[1])))

    w1 = pad2(params["w1"], d_pad, h4p, compute_dtype)
    w2 = pad2(params["w2"], h4p, h2p, compute_dtype)
    w3 = pad2(params["w3"], h2p, h1p, compute_dtype)
    b1 = pad2(params["b1"], 1, h4p, jnp.float32)
    b2 = pad2(params["b2"], 1, h2p, jnp.float32)
    b3 = pad2(params["b3"], 1, h1p, jnp.float32)
    w4 = pad2(params["w4"].reshape(1, -1), 1, h1p, jnp.float32)   # [1, Hp]
    b4 = params["b4"].reshape(1, 1).astype(jnp.float32)           # [1, 1]

    weight_bytes = sum(int(a.size) * a.dtype.itemsize
                       for a in (w1, b1, w2, b2, w3, b3, w4, b4))
    cost = pl.CostEstimate(
        flops=2 * padded_B * (d_pad * h4p + h4p * h2p + h2p * h1p + h1p),
        transcendentals=0,
        bytes_accessed=padded_B * d_pad * cd_bytes + weight_bytes + padded_B * 4,
    )

    def call(single_buffer_weights):
        def rep(shape):
            # Constant index_map -> VMEM-resident across grid steps; single
            # buffer (no point double-buffering a block that never changes).
            if single_buffer_weights:
                return pl.BlockSpec(shape, lambda i: (0, 0),
                                    pipeline_mode=pl.Buffered(1))
            return pl.BlockSpec(shape, lambda i: (0, 0))

        return pl.pallas_call(
            discriminator_kernel,
            out_shape=jax.ShapeDtypeStruct((num_tiles, 1, bt), jnp.float32),
            grid_spec=pltpu.PrefetchScalarGridSpec(
                num_scalar_prefetch=0,
                grid=(num_tiles,),
                in_specs=[
                    pl.BlockSpec((bt, d_pad), lambda i: (i, 0)),
                    rep(w1.shape), rep(b1.shape),
                    rep(w2.shape), rep(b2.shape),
                    rep(w3.shape), rep(b3.shape),
                    rep(w4.shape), rep(b4.shape),
                ],
                out_specs=pl.BlockSpec((1, 1, bt), lambda i: (i, 0, 0)),
            ),
            compiler_params=pltpu.CompilerParams(
                # Batch tiles are independent -> shard across TCs on v7x.
                dimension_semantics=("parallel",),
                vmem_limit_bytes=vmem_limit,
            ),
            cost_estimate=cost,
        )(x_c, w1, b1, w2, b2, w3, b3, w4, b4)

    try:
        out = call(True)
    except Exception:
        # pl.Buffered(1) not supported on this jax version -> default buffering.
        out = call(False)

    # [num_tiles, 1, bt] (batch on lanes) -> [B, 1]
    return out.reshape(padded_B, 1)[:B]


def init_discriminator_params(key, im_dim, hidden_dim):
    """Deterministic init mimicking PyTorch Linear default U(-1/sqrt(fan_in), +)."""
    dims = [im_dim, hidden_dim * 4, hidden_dim * 2, hidden_dim, 1]
    params = {}
    keys = jax.random.split(key, 2 * (len(dims) - 1))
    for li in range(len(dims) - 1):
        fan_in, fan_out = dims[li], dims[li + 1]
        bound = 1.0 / (fan_in ** 0.5)
        wk, bk = keys[2 * li], keys[2 * li + 1]
        params[f"w{li + 1}"] = jax.random.uniform(
            wk, (fan_in, fan_out), jnp.float32, -bound, bound
        )
        params[f"b{li + 1}"] = jax.random.uniform(
            bk, (1, fan_out), jnp.float32, -bound, bound
        )
    return params


def discriminator_reference(x, params, compute_dtype=jnp.float32):
    """Pure-JAX reference using the same dtype strategy as the kernel."""
    h = x.astype(compute_dtype)
    act = None
    for li in (1, 2, 3):
        w = params[f"w{li}"].astype(compute_dtype)
        act = jnp.dot(h, w, preferred_element_type=jnp.float32) + params[f"b{li}"]
        act = jnp.where(act > 0, act, 0.2 * act)
        h = act.astype(compute_dtype)
    return (jnp.dot(act, params["w4"].astype(jnp.float32),
                    preferred_element_type=jnp.float32) + params["b4"])


if __name__ == "__main__":
    # Small shapes consistent with the module: im_dim = X_train.shape[1] -> 32,
    # hidden_dim = 32 -> layer widths 128 / 64 / 32 / 1.
    IM_DIM = 32
    HIDDEN = 32

    key = jax.random.PRNGKey(0)
    xkey, pkey, xkey2 = jax.random.split(key, 3)
    params = init_discriminator_params(pkey, IM_DIM, HIDDEN)

    # Case 1: tiny batch -> single tile.
    x = jax.random.normal(xkey, (8, IM_DIM), dtype=jnp.float32)
    out = jax.block_until_ready(discriminator_forward(x, params))
    assert out.shape == (8, 1), out.shape

    ref_bf16 = discriminator_reference(x, params, compute_dtype=jnp.bfloat16)
    assert jnp.allclose(out, ref_bf16, atol=2e-3, rtol=2e-3), (
        "mismatch vs bf16-matched reference",
        float(jnp.max(jnp.abs(out - ref_bf16))),
    )
    ref_f32 = discriminator_reference(x, params, compute_dtype=jnp.float32)
    assert jnp.allclose(out, ref_f32, atol=2e-1, rtol=1e-1), (
        "mismatch vs f32 reference",
        float(jnp.max(jnp.abs(out - ref_f32))),
    )

    # Case 2: ragged batch with a small tile -> multiple grid steps, even tile
    # count, batch / im_dim / hidden-width padding all exercised.
    x2 = jax.random.normal(xkey2, (300, IM_DIM), dtype=jnp.float32)
    out2 = jax.block_until_ready(
        discriminator_forward(x2, params, batch_tile=128))
    assert out2.shape == (300, 1), out2.shape
    ref2 = discriminator_reference(x2, params, compute_dtype=jnp.bfloat16)
    assert jnp.allclose(out2, ref2, atol=2e-3, rtol=2e-3), (
        "mismatch vs bf16-matched reference (multi-tile)",
        float(jnp.max(jnp.abs(out2 - ref2))),
    )

    print("KERNEL_OK")
</pallas_src>

<mosaic_0001>
module attributes {stable_mosaic.version = 11 : i64} {
  func.func @discriminator_kernel(%arg0: i32, %arg1: memref<128x128xbf16, #tpu.memory_space<vmem>>, %arg2: memref<128x128xbf16, #tpu.memory_space<vmem>>, %arg3: memref<1x128xf32, #tpu.memory_space<vmem>>, %arg4: memref<128x128xbf16, #tpu.memory_space<vmem>>, %arg5: memref<1x128xf32, #tpu.memory_space<vmem>>, %arg6: memref<128x128xbf16, #tpu.memory_space<vmem>>, %arg7: memref<1x128xf32, #tpu.memory_space<vmem>>, %arg8: memref<1x128xf32, #tpu.memory_space<vmem>>, %arg9: memref<1x1xf32, #tpu.memory_space<vmem>>, %arg10: memref<1x1x128xf32, #tpu.memory_space<vmem>>) attributes {dimension_semantics = [#tpu.dimension_semantics<parallel>], iteration_bounds = array<i64: 1>, scalar_prefetch = 0 : i64, scratch_operands = 0 : i64, tpu.core_type = #tpu.core_type<tc>, window_params = [{transform_indices = @transform_0, window_bounds = array<i64: 128, 128>}, {pipeline_mode = #tpu.pipeline_mode<synchronous>, transform_indices = @transform_1, window_bounds = array<i64: 128, 128>}, {pipeline_mode = #tpu.pipeline_mode<synchronous>, transform_indices = @transform_2, window_bounds = array<i64: 1, 128>}, {pipeline_mode = #tpu.pipeline_mode<synchronous>, transform_indices = @transform_3, window_bounds = array<i64: 128, 128>}, {pipeline_mode = #tpu.pipeline_mode<synchronous>, transform_indices = @transform_4, window_bounds = array<i64: 1, 128>}, {pipeline_mode = #tpu.pipeline_mode<synchronous>, transform_indices = @transform_5, window_bounds = array<i64: 128, 128>}, {pipeline_mode = #tpu.pipeline_mode<synchronous>, transform_indices = @transform_6, window_bounds = array<i64: 1, 128>}, {pipeline_mode = #tpu.pipeline_mode<synchronous>, transform_indices = @transform_7, window_bounds = array<i64: 1, 128>}, {pipeline_mode = #tpu.pipeline_mode<synchronous>, transform_indices = @transform_8, window_bounds = array<i64: 1, 1>}, {transform_indices = @transform_9, window_bounds = array<i64: 1, 1, 128>}]} {
    %c0 = arith.constant 0 : index
    %c0_0 = arith.constant 0 : index
    %0 = vector.load %arg1[%c0, %c0_0] : memref<128x128xbf16, #tpu.memory_space<vmem>>, vector<128x128xbf16>
    %c0_1 = arith.constant 0 : index
    %c0_2 = arith.constant 0 : index
    %1 = vector.load %arg2[%c0_1, %c0_2] : memref<128x128xbf16, #tpu.memory_space<vmem>>, vector<128x128xbf16>
    %cst = arith.constant dense<0.000000e+00> : vector<128x128xf32>
    %2 = tpu.matmul %0, %1, %cst {dimension_numbers = #tpu.dot_dimension_numbers<[1], [0], [0], [1], [0, 0, 1, 1], [], []>} : vector<128x128xbf16>, vector<128x128xbf16>, vector<128x128xf32> -> vector<128x128xf32>
    %c0_3 = arith.constant 0 : index
    %c0_4 = arith.constant 0 : index
    %3 = vector.load %arg3[%c0_3, %c0_4] : memref<1x128xf32, #tpu.memory_space<vmem>>, vector<1x128xf32>
    %4 = vector.broadcast %3 : vector<1x128xf32> to vector<128x128xf32>
    %5 = arith.addf %2, %4 : vector<128x128xf32>
    %cst_5 = arith.constant 0.000000e+00 : f32
    %6 = vector.broadcast %cst_5 : f32 to vector<128x128xf32>
    %7 = arith.cmpf ogt, %5, %6 : vector<128x128xf32>
    %cst_6 = arith.constant 2.000000e-01 : f32
    %8 = vector.broadcast %cst_6 : f32 to vector<128x128xf32>
    %9 = arith.mulf %8, %5 : vector<128x128xf32>
    %10 = arith.select %7, %5, %9 : vector<128x128xi1>, vector<128x128xf32>
    %11 = arith.truncf %10 : vector<128x128xf32> to vector<128x128xbf16>
    %c0_7 = arith.constant 0 : index
    %c0_8 = arith.constant 0 : index
    %12 = vector.load %arg4[%c0_7, %c0_8] : memref<128x128xbf16, #tpu.memory_space<vmem>>, vector<128x128xbf16>
    %cst_9 = arith.constant dense<0.000000e+00> : vector<128x128xf32>
    %13 = tpu.matmul %11, %12, %cst_9 {dimension_numbers = #tpu.dot_dimension_numbers<[1], [0], [0], [1], [0, 0, 1, 1], [], []>} : vector<128x128xbf16>, vector<128x128xbf16>, vector<128x128xf32> -> vector<128x128xf32>
    %c0_10 = arith.constant 0 : index
    %c0_11 = arith.constant 0 : index
    %14 = vector.load %arg5[%c0_10, %c0_11] : memref<1x128xf32, #tpu.memory_space<vmem>>, vector<1x128xf32>
    %15 = vector.broadcast %14 : vector<1x128xf32> to vector<128x128xf32>
    %16 = arith.addf %13, %15 : vector<128x128xf32>
    %cst_12 = arith.constant 0.000000e+00 : f32
    %17 = vector.broadcast %cst_12 : f32 to vector<128x128xf32>
    %18 = arith.cmpf ogt, %16, %17 : vector<128x128xf32>
    %cst_13 = arith.constant 2.000000e-01 : f32
    %19 = vector.broadcast %cst_13 : f32 to vector<128x128xf32>
    %20 = arith.mulf %19, %16 : vector<128x128xf32>
    %21 = arith.select %18, %16, %20 : vector<128x128xi1>, vector<128x128xf32>
    %22 = arith.truncf %21 : vector<128x128xf32> to vector<128x128xbf16>
    %c0_14 = arith.constant 0 : index
    %c0_15 = arith.constant 0 : index
    %23 = vector.load %arg6[%c0_14, %c0_15] : memref<128x128xbf16, #tpu.memory_space<vmem>>, vector<128x128xbf16>
    %cst_16 = arith.constant dense<0.000000e+00> : vector<128x128xf32>
    %24 = tpu.matmul %22, %23, %cst_16 {dimension_numbers = #tpu.dot_dimension_numbers<[1], [0], [0], [1], [0, 0, 1, 1], [], []>} : vector<128x128xbf16>, vector<128x128xbf16>, vector<128x128xf32> -> vector<128x128xf32>
    %c0_17 = arith.constant 0 : index
    %c0_18 = arith.constant 0 : index
    %25 = vector.load %arg7[%c0_17, %c0_18] : memref<1x128xf32, #tpu.memory_space<vmem>>, vector<1x128xf32>
    %26 = vector.broadcast %25 : vector<1x128xf32> to vector<128x128xf32>
    %27 = arith.addf %24, %26 : vector<128x128xf32>
    %cst_19 = arith.constant 0.000000e+00 : f32
    %28 = vector.broadcast %cst_19 : f32 to vector<128x128xf32>
    %29 = arith.cmpf ogt, %27, %28 : vector<128x128xf32>
    %cst_20 = arith.constant 2.000000e-01 : f32
    %30 = vector.broadcast %cst_20 : f32 to vector<128x128xf32>
    %31 = arith.mulf %30, %27 : vector<128x128xf32>
    %32 = arith.select %29, %27, %31 : vector<128x128xi1>, vector<128x128xf32>
    %c0_21 = arith.constant 0 : index
    %c0_22 = arith.constant 0 : index
    %33 = vector.load %arg8[%c0_21, %c0_22] : memref<1x128xf32, #tpu.memory_space<vmem>>, vector<1x128xf32>
    %cst_23 = arith.constant dense<0.000000e+00> : vector<1x128xf32>
    %34 = tpu.matmul %33, %32, %cst_23 {dimension_numbers = #tpu.dot_dimension_numbers<[1], [1], [0], [0], [0, 0, 1, 0], [], []>} : vector<1x128xf32>, vector<128x128xf32>, vector<1x128xf32> -> vector<1x128xf32>
    %c0_24 = arith.constant 0 : index
    %c0_25 = arith.constant 0 : index
    %35 = vector.load %arg9[%c0_24, %c0_25] : memref<1x1xf32, #tpu.memory_space<vmem>>, vector<1x1xf32>
    %36 = vector.broadcast %35 : vector<1x1xf32> to vector<1x128xf32>
    %37 = arith.addf %34, %36 : vector<1x128xf32>
    %c0_26 = arith.constant 0 : index
    %c0_27 = arith.constant 0 : index
    %c0_28 = arith.constant 0 : index
    %38 = vector.load %arg10[%c0_26, %c0_27, %c0_28] : memref<1x1x128xf32, #tpu.memory_space<vmem>>, vector<1x1x128xf32>
    %39 = vector.shape_cast %38 : vector<1x1x128xf32> to vector<1x128xf32>
    %40 = vector.shape_cast %37 : vector<1x128xf32> to vector<1x1x128xf32>
    tpu.vector_store %arg10[%c0_26, %c0_27, %c0_28], %40 {strides = array<i32>} : memref<1x1x128xf32, #tpu.memory_space<vmem>>, vector<1x1x128xf32>,
    return
  }
  func.func @transform_0(%arg0: i32) -> (i32, i32) {
    %c0_i32 = arith.constant 0 : i32
    %c0_i32_0 = arith.constant 0 : i32
    return %arg0, %c0_i32 : i32, i32
  }
  func.func @transform_1(%arg0: i32) -> (i32, i32) {
    %c0_i32 = arith.constant 0 : i32
    %c0_i32_0 = arith.constant 0 : i32
    %c0_i32_1 = arith.constant 0 : i32
    return %c0_i32, %c0_i32_0 : i32, i32
  }
  func.func @transform_2(%arg0: i32) -> (i32, i32) {
    %c0_i32 = arith.constant 0 : i32
    %c0_i32_0 = arith.constant 0 : i32
    %c0_i32_1 = arith.constant 0 : i32
    return %c0_i32, %c0_i32_0 : i32, i32
  }
  func.func @transform_3(%arg0: i32) -> (i32, i32) {
    %c0_i32 = arith.constant 0 : i32
    %c0_i32_0 = arith.constant 0 : i32
    %c0_i32_1 = arith.constant 0 : i32
    return %c0_i32, %c0_i32_0 : i32, i32
  }
  func.func @transform_4(%arg0: i32) -> (i32, i32) {
    %c0_i32 = arith.constant 0 : i32
    %c0_i32_0 = arith.constant 0 : i32
    %c0_i32_1 = arith.constant 0 : i32
    return %c0_i32, %c0_i32_0 : i32, i32
  }
  func.func @transform_5(%arg0: i32) -> (i32, i32) {
    %c0_i32 = arith.constant 0 : i32
    %c0_i32_0 = arith.constant 0 : i32
    %c0_i32_1 = arith.constant 0 : i32
    return %c0_i32, %c0_i32_0 : i32, i32
  }
  func.func @transform_6(%arg0: i32) -> (i32, i32) {
    %c0_i32 = arith.constant 0 : i32
    %c0_i32_0 = arith.constant 0 : i32
    %c0_i32_1 = arith.constant 0 : i32
    return %c0_i32, %c0_i32_0 : i32, i32
  }
  func.func @transform_7(%arg0: i32) -> (i32, i32) {
    %c0_i32 = arith.constant 0 : i32
    %c0_i32_0 = arith.constant 0 : i32
    %c0_i32_1 = arith.constant 0 : i32
    return %c0_i32, %c0_i32_0 : i32, i32
  }
  func.func @transform_8(%arg0: i32) -> (i32, i32) {
    %c0_i32 = arith.constant 0 : i32
    %c0_i32_0 = arith.constant 0 : i32
    %c0_i32_1 = arith.constant 0 : i32
    return %c0_i32, %c0_i32_0 : i32, i32
  }
  func.func @transform_9(%arg0: i32) -> (i32, i32, i32) {
    %c0_i32 = arith.constant 0 : i32
    %c0_i32_0 = arith.constant 0 : i32
    %c0_i32_1 = arith.constant 0 : i32
    return %arg0, %c0_i32, %c0_i32_0 : i32, i32, i32
  }
}

module attributes {stable_mosaic.version = 11 : i64} {
  func.func @discriminator_kernel(%arg0: i32, %arg1: memref<128x128xbf16, #tpu.memory_space<vmem>>, %arg2: memref<128x128xbf16, #tpu.memory_space<vmem>>, %arg3: memref<1x128xf32, #tpu.memory_space<vmem>>, %arg4: memref<128x128xbf16, #tpu.memory_space<vmem>>, %arg5: memref<1x128xf32, #tpu.memory_space<vmem>>, %arg6: memref<128x128xbf16, #tpu.memory_space<vmem>>, %arg7: memref<1x128xf32, #tpu.memory_space<vmem>>, %arg8: memref<1x128xf32, #tpu.memory_space<vmem>>, %arg9: memref<1x1xf32, #tpu.memory_space<vmem>>, %arg10: memref<1x1x128xf32, #tpu.memory_space<vmem>>) attributes {dimension_semantics = [#tpu.dimension_semantics<parallel>], iteration_bounds = array<i64: 1>, scalar_prefetch = 0 : i64, scratch_operands = 0 : i64, tpu.core_type = #tpu.core_type<tc>, window_params = [{transform_indices = @transform_0, window_bounds = array<i64: 128, 128>}, {pipeline_mode = #tpu.pipeline_mode<synchronous>, transform_indices = @transform_1, window_bounds = array<i64: 128, 128>}, {pipeline_mode = #tpu.pipeline_mode<synchronous>, transform_indices = @transform_2, window_bounds = array<i64: 1, 128>}, {pipeline_mode = #tpu.pipeline_mode<synchronous>, transform_indices = @transform_3, window_bounds = array<i64: 128, 128>}, {pipeline_mode = #tpu.pipeline_mode<synchronous>, transform_indices = @transform_4, window_bounds = array<i64: 1, 128>}, {pipeline_mode = #tpu.pipeline_mode<synchronous>, transform_indices = @transform_5, window_bounds = array<i64: 128, 128>}, {pipeline_mode = #tpu.pipeline_mode<synchronous>, transform_indices = @transform_6, window_bounds = array<i64: 1, 128>}, {pipeline_mode = #tpu.pipeline_mode<synchronous>, transform_indices = @transform_7, window_bounds = array<i64: 1, 128>}, {pipeline_mode = #tpu.pipeline_mode<synchronous>, transform_indices = @transform_8, window_bounds = array<i64: 1, 1>}, {transform_indices = @transform_9, window_bounds = array<i64: 1, 1, 128>}]} {
    %c0 = arith.constant 0 : index
    %c0_0 = arith.constant 0 : index
    %0 = vector.load %arg1[%c0, %c0_0] : memref<128x128xbf16, #tpu.memory_space<vmem>>, vector<128x128xbf16>
    %c0_1 = arith.constant 0 : index
    %c0_2 = arith.constant 0 : index
    %1 = vector.load %arg2[%c0_1, %c0_2] : memref<128x128xbf16, #tpu.memory_space<vmem>>, vector<128x128xbf16>
    %cst = arith.constant dense<0.000000e+00> : vector<128x128xf32>
    %2 = tpu.matmul %0, %1, %cst {dimension_numbers = #tpu.dot_dimension_numbers<[1], [0], [0], [1], [0, 0, 1, 1], [], []>} : vector<128x128xbf16>, vector<128x128xbf16>, vector<128x128xf32> -> vector<128x128xf32>
    %c0_3 = arith.constant 0 : index
    %c0_4 = arith.constant 0 : index
    %3 = vector.load %arg3[%c0_3, %c0_4] : memref<1x128xf32, #tpu.memory_space<vmem>>, vector<1x128xf32>
    %4 = vector.broadcast %3 : vector<1x128xf32> to vector<128x128xf32>
    %5 = arith.addf %2, %4 : vector<128x128xf32>
    %cst_5 = arith.constant 0.000000e+00 : f32
    %6 = vector.broadcast %cst_5 : f32 to vector<128x128xf32>
    %7 = arith.cmpf ogt, %5, %6 : vector<128x128xf32>
    %cst_6 = arith.constant 2.000000e-01 : f32
    %8 = vector.broadcast %cst_6 : f32 to vector<128x128xf32>
    %9 = arith.mulf %8, %5 : vector<128x128xf32>
    %10 = arith.select %7, %5, %9 : vector<128x128xi1>, vector<128x128xf32>
    %11 = arith.truncf %10 : vector<128x128xf32> to vector<128x128xbf16>
    %c0_7 = arith.constant 0 : index
    %c0_8 = arith.constant 0 : index
    %12 = vector.load %arg4[%c0_7, %c0_8] : memref<128x128xbf16, #tpu.memory_space<vmem>>, vector<128x128xbf16>
    %cst_9 = arith.constant dense<0.000000e+00> : vector<128x128xf32>
    %13 = tpu.matmul %11, %12, %cst_9 {dimension_numbers = #tpu.dot_dimension_numbers<[1], [0], [0], [1], [0, 0, 1, 1], [], []>} : vector<128x128xbf16>, vector<128x128xbf16>, vector<128x128xf32> -> vector<128x128xf32>
    %c0_10 = arith.constant 0 : index
    %c0_11 = arith.constant 0 : index
    %14 = vector.load %arg5[%c0_10, %c0_11] : memref<1x128xf32, #tpu.memory_space<vmem>>, vector<1x128xf32>
    %15 = vector.broadcast %14 : vector<1x128xf32> to vector<128x128xf32>
    %16 = arith.addf %13, %15 : vector<128x128xf32>
    %cst_12 = arith.constant 0.000000e+00 : f32
    %17 = vector.broadcast %cst_12 : f32 to vector<128x128xf32>
    %18 = arith.cmpf ogt, %16, %17 : vector<128x128xf32>
    %cst_13 = arith.constant 2.000000e-01 : f32
    %19 = vector.broadcast %cst_13 : f32 to vector<128x128xf32>
    %20 = arith.mulf %19, %16 : vector<128x128xf32>
    %21 = arith.select %18, %16, %20 : vector<128x128xi1>, vector<128x128xf32>
    %22 = arith.truncf %21 : vector<128x128xf32> to vector<128x128xbf16>
    %c0_14 = arith.constant 0 : index
    %c0_15 = arith.constant 0 : index
    %23 = vector.load %arg6[%c0_14, %c0_15] : memref<128x128xbf16, #tpu.memory_space<vmem>>, vector<128x128xbf16>
    %cst_16 = arith.constant dense<0.000000e+00> : vector<128x128xf32>
    %24 = tpu.matmul %22, %23, %cst_16 {dimension_numbers = #tpu.dot_dimension_numbers<[1], [0], [0], [1], [0, 0, 1, 1], [], []>} : vector<128x128xbf16>, vector<128x128xbf16>, vector<128x128xf32> -> vector<128x128xf32>
    %c0_17 = arith.constant 0 : index
    %c0_18 = arith.constant 0 : index
    %25 = vector.load %arg7[%c0_17, %c0_18] : memref<1x128xf32, #tpu.memory_space<vmem>>, vector<1x128xf32>
    %26 = vector.broadcast %25 : vector<1x128xf32> to vector<128x128xf32>
    %27 = arith.addf %24, %26 : vector<128x128xf32>
    %cst_19 = arith.constant 0.000000e+00 : f32
    %28 = vector.broadcast %cst_19 : f32 to vector<128x128xf32>
    %29 = arith.cmpf ogt, %27, %28 : vector<128x128xf32>
    %cst_20 = arith.constant 2.000000e-01 : f32
    %30 = vector.broadcast %cst_20 : f32 to vector<128x128xf32>
    %31 = arith.mulf %30, %27 : vector<128x128xf32>
    %32 = arith.select %29, %27, %31 : vector<128x128xi1>, vector<128x128xf32>
    %c0_21 = arith.constant 0 : index
    %c0_22 = arith.constant 0 : index
    %33 = vector.load %arg8[%c0_21, %c0_22] : memref<1x128xf32, #tpu.memory_space<vmem>>, vector<1x128xf32>
    %cst_23 = arith.constant dense<0.000000e+00> : vector<1x128xf32>
    %34 = tpu.matmul %33, %32, %cst_23 {dimension_numbers = #tpu.dot_dimension_numbers<[1], [1], [0], [0], [0, 0, 1, 0], [], []>} : vector<1x128xf32>, vector<128x128xf32>, vector<1x128xf32> -> vector<1x128xf32>
    %c0_24 = arith.constant 0 : index
    %c0_25 = arith.constant 0 : index
    %35 = vector.load %arg9[%c0_24, %c0_25] : memref<1x1xf32, #tpu.memory_space<vmem>>, vector<1x1xf32>
    %36 = vector.broadcast %35 : vector<1x1xf32> to vector<1x128xf32>
    %37 = arith.addf %34, %36 : vector<1x128xf32>
    %c0_26 = arith.constant 0 : index
    %c0_27 = arith.constant 0 : index
    %c0_28 = arith.constant 0 : index
    %38 = vector.load %arg10[%c0_26, %c0_27, %c0_28] : memref<1x1x128xf32, #tpu.memory_space<vmem>>, vector<1x1x128xf32>
    %39 = vector.shape_cast %38 : vector<1x1x128xf32> to vector<1x128xf32>
    %40 = vector.shape_cast %37 : vector<1x128xf32> to vector<1x1x128xf32>
    tpu.vector_store %arg10[%c0_26, %c0_27, %c0_28], %40 {strides = array<i32>} : memref<1x1x128xf32, #tpu.memory_space<vmem>>, vector<1x1x128xf32>,
    return
  }
  func.func @transform_0(%arg0: i32) -> (i32, i32) {
    %c0_i32 = arith.constant 0 : i32
    %c0_i32_0 = arith.constant 0 : i32
    return %arg0, %c0_i32 : i32, i32
  }
  func.func @transform_1(%arg0: i32) -> (i32, i32) {
    %c0_i32 = arith.constant 0 : i32
    %c0_i32_0 = arith.constant 0 : i32
    %c0_i32_1 = arith.constant 0 : i32
    return %c0_i32, %c0_i32_0 : i32, i32
  }
  func.func @transform_2(%arg0: i32) -> (i32, i32) {
    %c0_i32 = arith.constant 0 : i32
    %c0_i32_0 = arith.constant 0 : i32
    %c0_i32_1 = arith.constant 0 : i32
    return %c0_i32, %c0_i32_0 : i32, i32
  }
  func.func @transform_3(%arg0: i32) -> (i32, i32) {
    %c0_i32 = arith.constant 0 : i32
    %c0_i32_0 = arith.constant 0 : i32
    %c0_i32_1 = arith.constant 0 : i32
    return %c0_i32, %c0_i32_0 : i32, i32
  }
  func.func @transform_4(%arg0: i32) -> (i32, i32) {
    %c0_i32 = arith.constant 0 : i32
    %c0_i32_0 = arith.constant 0 : i32
    %c0_i32_1 = arith.constant 0 : i32
    return %c0_i32, %c0_i32_0 : i32, i32
  }
  func.func @transform_5(%arg0: i32) -> (i32, i32) {
    %c0_i32 = arith.constant 0 : i32
    %c0_i32_0 = arith.constant 0 : i32
    %c0_i32_1 = arith.constant 0 : i32
    return %c0_i32, %c0_i32_0 : i32, i32
  }
  func.func @transform_6(%arg0: i32) -> (i32, i32) {
    %c0_i32 = arith.constant 0 : i32
    %c0_i32_0 = arith.constant 0 : i32
    %c0_i32_1 = arith.constant 0 : i32
    return %c0_i32, %c0_i32_0 : i32, i32
  }
  func.func @transform_7(%arg0: i32) -> (i32, i32) {
    %c0_i32 = arith.constant 0 : i32
    %c0_i32_0 = arith.constant 0 : i32
    %c0_i32_1 = arith.constant 0 : i32
    return %c0_i32, %c0_i32_0 : i32, i32
  }
  func.func @transform_8(%arg0: i32) -> (i32, i32) {
    %c0_i32 = arith.constant 0 : i32
    %c0_i32_0 = arith.constant 0 : i32
    %c0_i32_1 = arith.constant 0 : i32
    return %c0_i32, %c0_i32_0 : i32, i32
  }
  func.func @transform_9(%arg0: i32) -> (i32, i32, i32) {
    %c0_i32 = arith.constant 0 : i32
    %c0_i32_0 = arith.constant 0 : i32
    %c0_i32_1 = arith.constant 0 : i32
    return %arg0, %c0_i32, %c0_i32_0 : i32, i32, i32
  }
}

</mosaic_0001>

<bundles_post_ra>
// kernel: tpu_custom_call.1
= control target key start
LH: loop header
LB: loop body
LE: loop exit
PB: predicated region body
PF: predicated region fallthrough
CT: control target
= control target key end

     0   :  { %s1491_s0 = inlined_call_operand.hbm [shape: bf16[128,128], index: 0, kind: input, shape index: {}]   ;;  %s1492_s1 = inlined_call_operand.hbm [shape: bf16[128,128], index: 1, kind: input, shape index: {}]   ;;  %s1493_s2 = inlined_call_operand.vmem [shape: f32[1,128], index: 2, kind: input, shape index: {}]   ;;  %s1494_s3 = inlined_call_operand.hbm [shape: bf16[128,128], index: 3, kind: input, shape index: {}]   ;;  %s1495_s4 = inlined_call_operand.vmem [shape: f32[1,128], index: 4, kind: input, shape index: {}]   ;;  %s1496_s5 = inlined_call_operand.hbm [shape: bf16[128,128], index: 5, kind: input, shape index: {}]   ;;  %s1497_s6 = inlined_call_operand.vmem [shape: f32[1,128], index: 6, kind: input, shape index: {}]   ;;  %s1498_s7 = inlined_call_operand.vmem [shape: f32[1,128], index: 7, kind: input, shape index: {}]   ;;  %s1499_s8 = inlined_call_operand.<no memory space> [shape: f32[1,1], index: 8, kind: input, shape index: {}]   ;;  %s1500_s9 = inlined_call_operand.hbm [shape: f32[1,1,128], index: 9, kind: output, shape index: {}]  }
   0x1   :  { %v14_v0 = vstv %s1499_s8 }
   0x2   :  { %15 = vst [vmem:[#allocation2] sm:$0x1] %v14_v0 }
   0x3   :  { %16 = vsyncpa [#allocation4], 0 }
   0x4   :  { %17 = vsyncpa [#allocation7], 0 }
   0x5   :  { %18 = vsyncpa [#allocation10], 0 }
   0x6   :  { %19 = vsyncpa [#allocation5], 0  ;;  %s1300_s11 = smov [#allocation6]   ;;  %s1301_s13 = smov [#allocation3]  }
   0x7   :  { %s37_s12 = sshll.u32 %s1300_s11, 4  ;;  %s25_s14 = sshll.u32 %s1301_s13, 4  ;;  %s38_s12 = int_to_ptr.vmem [resolvable:$true] %s37_s12  ;;  %s26_s14 = int_to_ptr.vmem [resolvable:$true] %s25_s14 }
   0x8   :  { %s1200_s15 = scalar_lea.vmem %s38_s12, 1024  ;;  %p1205_p1 = scmp.lt.s32.totalorder %s38_s12, %s38_s12 }
   0x9   :  { %p1201_p0 = scmp.ne.s32.totalorder %s38_s12, %s1200_s15  ;;  %p1206_p2 = scmp.lt.s32.totalorder %s1200_s15, %s1200_s15 }
   0xb   :  { %p1207_p3 = por %p1206_p2, %p1205_p1 }
   0xd   :  { %p1208_p4 = pnand %p1207_p3, %p1201_p0 }
   0xf   :  { %1211 = shalt.err (!%p1208_p4)
}
  0x10   :  { %s1302_s16 = smov 64   ;;  %s1303_s8 = smov 4  }
  0x11   :  { %43 = dma.hbm_to_vmem [thread:$0]  %s1492_s1, 1024, %s38_s12, [#allocation7], %s1302_s16, %s1302_s16, %s1303_s8  }
  0x12   :  { %s1220_s19 = scalar_lea.vmem %s26_s14, 1024  ;;  %p1225_p6 = scmp.lt.s32.totalorder %s26_s14, %s26_s14 }
  0x13   :  { %p1221_p5 = scmp.ne.s32.totalorder %s26_s14, %s1220_s19  ;;  %p1226_p7 = scmp.lt.s32.totalorder %s1220_s19, %s1220_s19 }
  0x15   :  { %p1227_p8 = por %p1226_p7, %p1225_p6 }
  0x17   :  { %p1228_p9 = pnand %p1227_p8, %p1221_p5 }
  0x19   :  { %1231 = shalt.err (!%p1228_p9)
}
  0x1a   :  { %31 = dma.hbm_to_vmem [thread:$0]  %s1491_s0, 1024, %s26_s14, [#allocation4], %s1302_s16, %s1302_s16, %s1303_s8  }
  0x1b   :  { %s1304_s22 = smov [#allocation8]   ;;  %s1305_s24 = smov [#allocation9]  }
  0x1c   :  { %s51_s23 = sshll.u32 %s1304_s22, 4  ;;  %s65_s25 = sshll.u32 %s1305_s24, 4  ;;  %s52_s23 = int_to_ptr.vmem [resolvable:$true] %s51_s23  ;;  %s66_s25 = int_to_ptr.vmem [resolvable:$true] %s65_s25 }
  0x1d   :  { %s1240_s1 = scalar_lea.vmem %s52_s23, 1024  ;;  %p1245_p11 = scmp.lt.s32.totalorder %s52_s23, %s52_s23 }
  0x1e   :  { %p1241_p10 = scmp.ne.s32.totalorder %s52_s23, %s1240_s1  ;;  %p1246_p12 = scmp.lt.s32.totalorder %s1240_s1, %s1240_s1 }
  0x20   :  { %p1247_p13 = por %p1246_p12, %p1245_p11 }
  0x22   :  { %p1248_p0 = pnand %p1247_p13, %p1241_p10 }
  0x24   :  { %1251 = shalt.err (!%p1248_p0)
}
  0x25   :  { %57 = dma.hbm_to_vmem [thread:$0]  %s1494_s3, 1024, %s52_s23, [#allocation7], %s1302_s16, %s1302_s16, %s1303_s8  }
  0x26   :  { %s1260_s0 = scalar_lea.vmem %s66_s25, 1024  ;;  %p1265_p2 = scmp.lt.s32.totalorder %s66_s25, %s66_s25 }
  0x27   :  { %p1261_p1 = scmp.ne.s32.totalorder %s66_s25, %s1260_s0  ;;  %p1266_p3 = scmp.lt.s32.totalorder %s1260_s0, %s1260_s0 }
  0x29   :  { %p1267_p4 = por %p1266_p3, %p1265_p2 }
  0x2b   :  { %p1268_p5 = pnand %p1267_p4, %p1261_p1 }
  0x2d   :  { %1271 = shalt.err (!%p1268_p5)
}
  0x2e   :  { %71 = dma.hbm_to_vmem [thread:$0]  %s1496_s5, 1024, %s66_s25, [#allocation10], %s1302_s16, %s1302_s16, %s1303_s8  }
  0x2f   :  { %1292 = dma.done.wait [#allocation4], 1024  }
  0x30   :  { %1293 = vsyncadd [#allocation4], 4294966272 }
  0x31   :  { %1294 = dma.done.wait [#allocation7], 2048  }
  0x32   :  { %1295 = vsyncadd [#allocation7], 4294965248 }
  0x33   :  { %1296 = dma.done.wait [#allocation10], 1024  }
  0x34   :  { %1297 = vsyncadd [#allocation10], 4294966272  ;;  %v1160_v1 = vld [vmem:[#allocation6 + $0x38] sm:$0xff]   ;;  %v1161_v2 = vld [vmem:[#allocation6 + $0x30] sm:$0xff]   ;;  %s1309_s12 = smov [#allocation11]  }
  0x35   :  { %1018 = vmatprep.subr.bf16.mxu0 %v1160_v1  ;;  %v1162_v3 = vld [vmem:[#allocation6 + $0x28] sm:$0xff]   ;;  %v1163_v4 = vld [vmem:[#allocation6 + $0x20] sm:$0xff]   ;;  %v1164_v6 = vld [vmem:[#allocation6 + $0x18] sm:$0xff]   ;;  %s907_s13 = sshll.u32 %s1309_s12, 4  ;;  %s908_s13 = int_to_ptr.vmem [resolvable:$true] %s907_s13 }
  0x36   :  { %1019 = vmatpush3.bf16.msra.mxu0 %v1160_v1  ;;  %v1168_v5 = vld [vmem:[#allocation3] sm:$0xff]   ;;  %v1165_v7 = vld [vmem:[#allocation6 + $0x10] sm:$0xff]   ;;  %v1176_v8 = vld [vmem:[#allocation8 + $0x38] sm:$0xff]   ;;  %s1272_s14 = scalar_lea.vmem %s908_s13, 16  ;;  %s1276_s15 = scalar_lea.vmem %s908_s13, 32 }
  0x37   :  { %1020 = vmatprep.subr.bf16.mxu0 %v1161_v2  ;;  %1034 = vmatprep.mubr.bf16.mxu0 %v1168_v5  ;;  %v1177_v9 = vld [vmem:[#allocation8 + $0x30] sm:$0xff]   ;;  %v1166_v10 = vld [vmem:[#allocation6 + $0x8] sm:$0xff]   ;;  %v1167_v12 = vld [vmem:[#allocation6] sm:$0xff]   ;;  %p1273_p6 = scmp.ne.s32.totalorder %s908_s13, %s1272_s14  ;;  %p1277_p7 = scmp.lt.s32.totalorder %s908_s13, %s908_s13 }
  0x38   :  { %1050 = vmatprep.subr.bf16.mxu1 %v1176_v8  ;;  %v1178_v11 = vld [vmem:[#allocation8 + $0x28] sm:$0xff]   ;;  %v1179_v13 = vld [vmem:[#allocation8 + $0x20] sm:$0xff]   ;;  %v1180_v14 = vld [vmem:[#allocation8 + $0x18] sm:$0xff]   ;;  %p1278_p8 = scmp.lt.s32.totalorder %s1276_s15, %s1272_s14 }
  0x39   :  { %1051 = vmatpush3.bf16.msra.mxu1 %v1176_v8  ;;  %v1169_v15 = vld [vmem:[#allocation3 + $0x8] sm:$0xff]   ;;  %v1170_v16 = vld [vmem:[#allocation3 + $0x10] sm:$0xff]   ;;  %v1171_v17 = vld [vmem:[#allocation3 + $0x18] sm:$0xff]  }
  0x3a   :  { %1021 = vmatpush3.bf16.msra.mxu0 %v1161_v2  ;;  %1052 = vmatprep.subr.bf16.mxu1 %v1177_v9  ;;  %v1172_v18 = vld [vmem:[#allocation3 + $0x20] sm:$0xff]   ;;  %v1173_v19 = vld [vmem:[#allocation3 + $0x28] sm:$0xff]   ;;  %v1174_v20 = vld [vmem:[#allocation3 + $0x30] sm:$0xff]   ;;  %p1279_p9 = por %p1278_p8, %p1277_p7 }
  0x3b   :  { %1022 = vmatprep.subr.bf16.mxu0 %v1162_v3  ;;  %v1175_v21 = vld [vmem:[#allocation3 + $0x38] sm:$0xff]   ;;  %v1181_v22 = vld [vmem:[#allocation8 + $0x10] sm:$0xff]   ;;  %v1182_v23 = vld [vmem:[#allocation8 + $0x8] sm:$0xff]  }
  0x3c   :  { %v1183_v24 = vld [vmem:[#allocation8] sm:$0xff]   ;;  %v1184_v25 = vld [vmem:[#allocation9 + $0x38] sm:$0xff]   ;;  %v1185_v26 = vld [vmem:[#allocation9 + $0x30] sm:$0xff]   ;;  %p1280_p10 = pnand %p1279_p9, %p1273_p6 }
  0x3d   :  { %1053 = vmatpush3.bf16.msra.mxu1 %v1177_v9  ;;  %v1186_v27 = vld [vmem:[#allocation9 + $0x28] sm:$0xff]   ;;  %v1187_v28 = vld [vmem:[#allocation9 + $0x20] sm:$0xff]   ;;  %v1188_v29 = vld [vmem:[#allocation9 + $0x18] sm:$0xff]  }
  0x3e   :  { %1023 = vmatpush3.bf16.msra.mxu0 %v1162_v3  ;;  %1054 = vmatprep.subr.bf16.mxu1 %v1178_v11  ;;  %v1390_v31 = vld [vmem:[%s1493_s2] ss:$0 sm:$0xff] }
  0x3f   :  { %1024 = vmatprep.subr.bf16.mxu0 %v1163_v4 }
  0x41   :  { %1055 = vmatpush3.bf16.msra.mxu1 %v1178_v11 }
  0x42   :  { %1025 = vmatpush3.bf16.msra.mxu0 %v1163_v4  ;;  %1056 = vmatprep.subr.bf16.mxu1 %v1179_v13 }
  0x43   :  { %1026 = vmatprep.subr.bf16.mxu0 %v1164_v6 }
  0x45   :  { %1057 = vmatpush3.bf16.msra.mxu1 %v1179_v13 }
  0x46   :  { %1027 = vmatpush3.bf16.msra.mxu0 %v1164_v6  ;;  %1058 = vmatprep.subr.bf16.mxu1 %v1180_v14 }
  0x47   :  { %1028 = vmatprep.subr.bf16.mxu0 %v1165_v7 }
  0x49   :  { %1059 = vmatpush3.bf16.msra.mxu1 %v1180_v14 }
  0x4a   :  { %1029 = vmatpush3.bf16.msra.mxu0 %v1165_v7  ;;  %1060 = vmatprep.subr.bf16.mxu1 %v1181_v22 }
  0x4b   :  { %1030 = vmatprep.subr.bf16.mxu0 %v1166_v10 }
  0x4d   :  { %1061 = vmatpush3.bf16.msra.mxu1 %v1181_v22 }
  0x4e   :  { %1031 = vmatpush3.bf16.msra.mxu0 %v1166_v10  ;;  %1062 = vmatprep.subr.bf16.mxu1 %v1182_v23 }
  0x4f   :  { %1032 = vmatprep.subr.bf16.mxu0 %v1167_v12 }
  0x51   :  { %1063 = vmatpush3.bf16.msra.mxu1 %v1182_v23 }
  0x52   :  { %1033 = vmatpush3.bf16.msra.mxu0 %v1167_v12  ;;  %1064 = vmatprep.subr.bf16.mxu1 %v1183_v24 }
  0x53   :  { %1082 = vmatprep.subr.bf16.mxu0 %v1184_v25 }
  0x55   :  { %1035 = vmatmul.mubr.bf16.vlgmr.msra.gmra.mxu0 %v1169_v15  ;;  %1065 = vmatpush3.bf16.msra.mxu1 %v1183_v24 }
  0x56   :  { %1038 = vmatprep.mubr.bf16.mxu0 %v1170_v16  ;;  %1083 = vmatpush3.bf16.msra.mxu0 %v1184_v25 }
  0x57   :  { %1084 = vmatprep.subr.bf16.mxu0 %v1185_v26 }
  0x5a   :  { %1085 = vmatpush3.bf16.msra.mxu0 %v1185_v26 }
  0x5b   :  { %1086 = vmatprep.subr.bf16.mxu0 %v1186_v27 }
  0x5d   :  { %1039 = vmatmul.mubr.bf16.gmra.mxu0 %v1171_v17 }
  0x5e   :  { %1042 = vmatprep.mubr.bf16.mxu0 %v1172_v18  ;;  %1087 = vmatpush3.bf16.msra.mxu0 %v1186_v27 }
  0x5f   :  { %1088 = vmatprep.subr.bf16.mxu0 %v1187_v28 }
  0x62   :  { %1089 = vmatpush3.bf16.msra.mxu0 %v1187_v28 }
  0x63   :  { %1090 = vmatprep.subr.bf16.mxu0 %v1188_v29 }
  0x65   :  { %1043 = vmatmul.mubr.bf16.gmra.mxu0 %v1173_v19 }
  0x66   :  { %1046 = vmatprep.mubr.bf16.mxu0 %v1174_v20  ;;  %1091 = vmatpush3.bf16.msra.mxu0 %v1188_v29 }
  0x6d   :  { %1047 = vmatmul.mubr.bf16.gmra.mxu0 %v1175_v21 }
 0x115   :  { %v1036_v30 = vpop.f32.mrf.mxu0 }
 0x116   :  { %v269_v34 = vadd.f32 %v1036_v30, %v1390_v31 }
 0x117   :  { %v260_v32 = vpop.f32.mrf.mxu0 }
 0x118   :  { %v261_v33 = vadd.f32 %v1390_v31, %v260_v32  ;;  %v341_v41 = vmul.f32 0.2, %v269_v34  ;;  %vm325_vm2 = vcmp.gt.f32.partialorder %v269_v34, 0.0 }
 0x119   :  { %v1037_v35 = vpop.f32.mrf.mxu0 }
 0x11a   :  { %v272_v36 = vadd.f32 %v1037_v35, %v1390_v31  ;;  %v339_v38 = vmul.f32 0.2, %v261_v33  ;;  %vm323_vm1 = vcmp.gt.f32.partialorder %v261_v33, 0.0  ;;  %v357_v52 = vsel %vm325_vm2, %v269_v34, %v341_v41  ;;  %v1190_v41 = vld [vmem:[#allocation9 + $0x8] sm:$0xff]  }
 0x11b   :  { %v263_v37 = vpop.f32.mrf.mxu0 }
 0x11c   :  { %vm326_vm0 = vcmp.gt.f32.partialorder %v272_v36, 0.0  ;;  %v342_v39 = vmul.f32 0.2, %v272_v36  ;;  %v264_v40 = vadd.f32 %v1390_v31, %v263_v37  ;;  %v355_v47 = vsel %vm323_vm1, %v261_v33, %v339_v38 }
 0x11d   :  { %v1040_v42 = vpop.f32.mrf.mxu0 }
 0x11e   :  { %v340_v43 = vmul.f32 0.2, %v264_v40  ;;  %vm324_vm3 = vcmp.gt.f32.partialorder %v264_v40, 0.0  ;;  %v358_v45 = vsel %vm326_vm0, %v272_v36, %v342_v39  ;;  %v285_v49 = vadd.f32 %v1040_v42, %v1390_v31 }
 0x11f   :  { %v276_v44 = vpop.f32.mrf.mxu0  ;;  %v372_v54 = vpack.c.bf16 %v358_v45, %v357_v52 }
 0x120   :  { %v277_v46 = vadd.f32 %v1390_v31, %v276_v44  ;;  %v356_v48 = vsel %vm324_vm3, %v264_v40, %v340_v43  ;;  %v345_v59 = vmul.f32 0.2, %v285_v49  ;;  %vm329_vm6 = vcmp.gt.f32.partialorder %v285_v49, 0.0  ;;  %v1189_v40 = vld [vmem:[#allocation9 + $0x10] sm:$0xff]   ;;  %v1411_v43 = vld [vmem:[%s1495_s4] ss:$0 sm:$0xff] }
 0x121   :  { %v1041_v50 = vpop.f32.mrf.mxu0  ;;  %v371_v51 = vpack.c.bf16 %v356_v48, %v355_v47  ;;  %1092 = vmatprep.subr.bf16.mxu0 %v1189_v40 }
 0x122   :  { %v288_v53 = vadd.f32 %v1041_v50, %v1390_v31  ;;  %v343_v56 = vmul.f32 0.2, %v277_v46  ;;  %vm327_vm5 = vcmp.gt.f32.partialorder %v277_v46, 0.0  ;;  %v361_v6 = vsel %vm329_vm6, %v285_v49, %v345_v59  ;;  %1093 = vmatpush3.bf16.msra.mxu0 %v1189_v40 }
 0x123   :  { %v279_v55 = vpop.f32.mrf.mxu0  ;;  %1066 = vmatprep.mubr.bf16.mxu1 %v371_v51  ;;  %1094 = vmatprep.subr.bf16.mxu0 %v1190_v41 }
 0x124   :  { %vm330_vm4 = vcmp.gt.f32.partialorder %v288_v53, 0.0  ;;  %v346_v57 = vmul.f32 0.2, %v288_v53  ;;  %v280_v58 = vadd.f32 %v1390_v31, %v279_v55  ;;  %1067 = vmatmul.mubr.bf16.vlgmr.msra.gmra.mxu1 %v372_v54  ;;  %v359_v1 = vsel %vm327_vm5, %v277_v46, %v343_v56 }
 0x125   :  { %v1044_v60 = vpop.f32.mrf.mxu0 }
 0x126   :  { %vm328_vm7 = vcmp.gt.f32.partialorder %v280_v58, 0.0  ;;  %v344_v61 = vmul.f32 0.2, %v280_v58  ;;  %v362_v63 = vsel %vm330_vm4, %v288_v53, %v346_v57  ;;  %v301_v3 = vadd.f32 %v1044_v60, %v1390_v31  ;;  %1095 = vmatpush3.bf16.msra.mxu0 %v1190_v41 }
 0x127   :  { %v292_v62 = vpop.f32.mrf.mxu0  ;;  %v374_v8 = vpack.c.bf16 %v362_v63, %v361_v6 }
 0x128   :  { %v293_v0 = vadd.f32 %v1390_v31, %v292_v62  ;;  %v360_v2 = vsel %vm328_vm7, %v280_v58, %v344_v61  ;;  %v349_v13 = vmul.f32 0.2, %v301_v3  ;;  %vm333_vm10 = vcmp.gt.f32.partialorder %v301_v3, 0.0 }
 0x129   :  { %v1045_v4 = vpop.f32.mrf.mxu0  ;;  %v373_v5 = vpack.c.bf16 %v360_v2, %v359_v1 }
 0x12a   :  { %v304_v7 = vadd.f32 %v1045_v4, %v1390_v31  ;;  %v347_v10 = vmul.f32 0.2, %v293_v0  ;;  %vm331_vm9 = vcmp.gt.f32.partialorder %v293_v0, 0.0  ;;  %v365_v24 = vsel %vm333_vm10, %v301_v3, %v349_v13 }
 0x12b   :  { %v295_v9 = vpop.f32.mrf.mxu0  ;;  %1070 = vmatprep.mubr.bf16.mxu1 %v373_v5 }
 0x12c   :  { %vm334_vm8 = vcmp.gt.f32.partialorder %v304_v7, 0.0  ;;  %v350_v11 = vmul.f32 0.2, %v304_v7  ;;  %v296_v12 = vadd.f32 %v1390_v31, %v295_v9  ;;  %1071 = vmatmul.mubr.bf16.gmra.mxu1 %v374_v8  ;;  %v363_v19 = vsel %vm331_vm9, %v293_v0, %v347_v10 }
 0x12d   :  { %v1048_v14 = vpop.f32.mrf.mxu0 }
 0x12e   :  { %vm332_vm11 = vcmp.gt.f32.partialorder %v296_v12, 0.0  ;;  %v348_v15 = vmul.f32 0.2, %v296_v12  ;;  %v366_v17 = vsel %vm334_vm8, %v304_v7, %v350_v11  ;;  %v317_v21 = vadd.f32 %v1048_v14, %v1390_v31 }
 0x12f   :  { %v308_v16 = vpop.f32.mrf.mxu0  ;;  %v376_v26 = vpack.c.bf16 %v366_v17, %v365_v24 }
 0x130   :  { %v309_v18 = vadd.f32 %v1390_v31, %v308_v16  ;;  %v364_v20 = vsel %vm332_vm11, %v296_v12, %v348_v15  ;;  %v353_v32 = vmul.f32 0.2, %v317_v21  ;;  %vm337_vm14 = vcmp.gt.f32.partialorder %v317_v21, 0.0 }
 0x131   :  { %v1049_v22 = vpop.f32.mrf.mxu0  ;;  %v375_v23 = vpack.c.bf16 %v364_v20, %v363_v19 }
 0x132   :  { %v320_v25 = vadd.f32 %v1049_v22, %v1390_v31  ;;  %v351_v28 = vmul.f32 0.2, %v309_v18  ;;  %vm335_vm13 = vcmp.gt.f32.partialorder %v309_v18, 0.0  ;;  %v369_v38 = vsel %vm337_vm14, %v317_v21, %v353_v32 }
 0x133   :  { %v311_v27 = vpop.f32.mrf.mxu0  ;;  %1074 = vmatprep.mubr.bf16.mxu1 %v375_v23 }
 0x134   :  { %vm338_vm12 = vcmp.gt.f32.partialorder %v320_v25, 0.0  ;;  %v354_v29 = vmul.f32 0.2, %v320_v25  ;;  %v312_v30 = vadd.f32 %v1390_v31, %v311_v27  ;;  %1075 = vmatmul.mubr.bf16.gmra.mxu1 %v376_v26  ;;  %v367_v35 = vsel %vm335_vm13, %v309_v18, %v351_v28  ;;  %v1191_v31 = vld [vmem:[#allocation9] sm:$0xff]  }
 0x135   :  { %1096 = vmatprep.subr.bf16.mxu0 %v1191_v31 }
 0x136   :  { %vm336_vm15 = vcmp.gt.f32.partialorder %v312_v30, 0.0  ;;  %v352_v33 = vmul.f32 0.2, %v312_v30  ;;  %v370_v34 = vsel %vm338_vm12, %v320_v25, %v354_v29  ;;  %1097 = vmatpush3.bf16.msra.mxu0 %v1191_v31 }
 0x137   :  { %v378_v39 = vpack.c.bf16 %v370_v34, %v369_v38 }
 0x138   :  { %v368_v36 = vsel %vm336_vm15, %v312_v30, %v352_v33 }
 0x139   :  { %v377_v37 = vpack.c.bf16 %v368_v36, %v367_v35 }
 0x13b   :  { %1078 = vmatprep.mubr.bf16.mxu1 %v377_v37 }
 0x13c   :  { %1079 = vmatmul.mubr.bf16.gmra.mxu1 %v378_v39 }
 0x1e4   :  { %v1068_v42 = vpop.f32.mrf.mxu1 }
 0x1e5   :  { %v493_v46 = vadd.f32 %v1068_v42, %v1411_v43 }
 0x1e6   :  { %v484_v44 = vpop.f32.mrf.mxu1 }
 0x1e7   :  { %v485_v45 = vadd.f32 %v1411_v43, %v484_v44  ;;  %v565_v53 = vmul.f32 0.2, %v493_v46  ;;  %vm549_vm2 = vcmp.gt.f32.partialorder %v493_v46, 0.0 }
 0x1e8   :  { %v1069_v47 = vpop.f32.mrf.mxu1 }
 0x1e9   :  { %v496_v48 = vadd.f32 %v1069_v47, %v1411_v43  ;;  %v563_v50 = vmul.f32 0.2, %v485_v45  ;;  %vm547_vm1 = vcmp.gt.f32.partialorder %v485_v45, 0.0  ;;  %v581_v61 = vsel %vm549_vm2, %v493_v46, %v565_v53 }
 0x1ea   :  { %v487_v49 = vpop.f32.mrf.mxu1  ;;  %v1308_v53 = vmov 0  }
 0x1eb   :  { %vm550_vm0 = vcmp.gt.f32.partialorder %v496_v48, 0.0  ;;  %v566_v51 = vmul.f32 0.2, %v496_v48  ;;  %v488_v52 = vadd.f32 %v1411_v43, %v487_v49  ;;  %v579_v59 = vsel %vm547_vm1, %v485_v45, %v563_v50  ;;  %1159 = vset.pattern.permute.xlu0 %v1308_v53 }
 0x1ec   :  { %v1072_v54 = vpop.f32.mrf.mxu1 }
 0x1ed   :  { %vm548_vm3 = vcmp.gt.f32.partialorder %v488_v52, 0.0  ;;  %v564_v55 = vmul.f32 0.2, %v488_v52  ;;  %v582_v56 = vsel %vm550_vm0, %v496_v48, %v566_v51  ;;  %v509_v62 = vadd.f32 %v1072_v54, %v1411_v43 }
 0x1ee   :  { %v500_v57 = vpop.f32.mrf.mxu1  ;;  %v596_v1 = vpack.c.bf16 %v582_v56, %v581_v61  ;;  %vm1307_vm0 = vmmov 0  }
 0x1ef   :  { %v501_v58 = vadd.f32 %v1411_v43, %v500_v57  ;;  %v580_v60 = vsel %vm548_vm3, %v488_v52, %v564_v55  ;;  %v569_v7 = vmul.f32 0.2, %v509_v62  ;;  %vm553_vm6 = vcmp.gt.f32.partialorder %v509_v62, 0.0 }
 0x1f0   :  { %v1073_v63 = vpop.f32.mrf.mxu1  ;;  %v595_v0 = vpack.c.bf16 %v580_v60, %v579_v59  ;;  %v1306_v52 = vmov 0.0  }
 0x1f1   :  { %v512_v2 = vadd.f32 %v1073_v63, %v1411_v43  ;;  %v567_v4 = vmul.f32 0.2, %v501_v58  ;;  %vm551_vm5 = vcmp.gt.f32.partialorder %v501_v58, 0.0  ;;  %v585_v18 = vsel %vm553_vm6, %v509_v62, %v569_v7  ;;  %1114 = vmatprep.subr.mxu1 %v1306_v52  ;;  %1146 = vmatprep.mubr.msk.f32.mxu1 %vm1307_vm0, %v1306_v52 }
 0x1f2   :  { %v503_v3 = vpop.f32.mrf.mxu1  ;;  %1098 = vmatprep.mubr.bf16.mxu0 %v595_v0 }
 0x1f3   :  { %vm554_vm4 = vcmp.gt.f32.partialorder %v512_v2, 0.0  ;;  %v570_v5 = vmul.f32 0.2, %v512_v2  ;;  %v504_v6 = vadd.f32 %v1411_v43, %v503_v3  ;;  %1099 = vmatmul.mubr.bf16.vlgmr.msra.gmra.mxu0 %v596_v1  ;;  %v583_v13 = vsel %vm551_vm5, %v501_v58, %v567_v4  ;;  %v1446_v4 = vld [vmem:[%s1497_s6] ss:$0 sm:$0xff] }
 0x1f4   :  { %v1076_v8 = vpop.f32.mrf.mxu1 }
 0x1f5   :  { %vm552_vm7 = vcmp.gt.f32.partialorder %v504_v6, 0.0  ;;  %v568_v9 = vmul.f32 0.2, %v504_v6  ;;  %v586_v11 = vsel %vm554_vm4, %v512_v2, %v570_v5  ;;  %v525_v15 = vadd.f32 %v1076_v8, %v1411_v43 }
 0x1f6   :  { %v516_v10 = vpop.f32.mrf.mxu1  ;;  %v598_v20 = vpack.c.bf16 %v586_v11, %v585_v18 }
 0x1f7   :  { %v517_v12 = vadd.f32 %v1411_v43, %v516_v10  ;;  %v584_v14 = vsel %vm552_vm7, %v504_v6, %v568_v9  ;;  %v573_v25 = vmul.f32 0.2, %v525_v15  ;;  %vm557_vm10 = vcmp.gt.f32.partialorder %v525_v15, 0.0 }
 0x1f8   :  { %v1077_v16 = vpop.f32.mrf.mxu1  ;;  %v597_v17 = vpack.c.bf16 %v584_v14, %v583_v13 }
 0x1f9   :  { %v528_v19 = vadd.f32 %v1077_v16, %v1411_v43  ;;  %v571_v22 = vmul.f32 0.2, %v517_v12  ;;  %vm555_vm9 = vcmp.gt.f32.partialorder %v517_v12, 0.0  ;;  %v589_v37 = vsel %vm557_vm10, %v525_v15, %v573_v25 }
 0x1fa   :  { %v519_v21 = vpop.f32.mrf.mxu1  ;;  %1102 = vmatprep.mubr.bf16.mxu0 %v597_v17 }
 0x1fb   :  { %vm558_vm8 = vcmp.gt.f32.partialorder %v528_v19, 0.0  ;;  %v574_v23 = vmul.f32 0.2, %v528_v19  ;;  %v520_v24 = vadd.f32 %v1411_v43, %v519_v21  ;;  %1103 = vmatmul.mubr.bf16.gmra.mxu0 %v598_v20  ;;  %v587_v32 = vsel %vm555_vm9, %v517_v12, %v571_v22 }
 0x1fc   :  { %v1080_v26 = vpop.f32.mrf.mxu1 }
 0x1fd   :  { %vm556_vm11 = vcmp.gt.f32.partialorder %v520_v24, 0.0  ;;  %v572_v27 = vmul.f32 0.2, %v520_v24  ;;  %v590_v29 = vsel %vm558_vm8, %v528_v19, %v574_v23  ;;  %v541_v34 = vadd.f32 %v1080_v26, %v1411_v43 }
 0x1fe   :  { %v532_v28 = vpop.f32.mrf.mxu1  ;;  %v600_v39 = vpack.c.bf16 %v590_v29, %v589_v37 }
 0x1ff   :  { %v533_v30 = vadd.f32 %v1411_v43, %v532_v28  ;;  %v588_v33 = vsel %vm556_vm11, %v520_v24, %v572_v27  ;;  %v577_v44 = vmul.f32 0.2, %v541_v34  ;;  %vm561_vm14 = vcmp.gt.f32.partialorder %v541_v34, 0.0 }
 0x200   :  { %v1081_v35 = vpop.f32.mrf.mxu1  ;;  %v599_v36 = vpack.c.bf16 %v588_v33, %v587_v32 }
 0x201   :  { %v544_v38 = vadd.f32 %v1081_v35, %v1411_v43  ;;  %v575_v41 = vmul.f32 0.2, %v533_v30  ;;  %vm559_vm13 = vcmp.gt.f32.partialorder %v533_v30, 0.0  ;;  %v593_v50 = vsel %vm561_vm14, %v541_v34, %v577_v44 }
 0x202   :  { %v535_v40 = vpop.f32.mrf.mxu1  ;;  %1106 = vmatprep.mubr.bf16.mxu0 %v599_v36 }
 0x203   :  { %vm562_vm12 = vcmp.gt.f32.partialorder %v544_v38, 0.0  ;;  %v578_v31 = vmul.f32 0.2, %v544_v38  ;;  %v536_v42 = vadd.f32 %v1411_v43, %v535_v40  ;;  %1107 = vmatmul.mubr.bf16.gmra.mxu0 %v600_v39  ;;  %v591_v47 = vsel %vm559_vm13, %v533_v30, %v575_v41  ;;  %v820_v43 = vld [vmem:[#allocation2] sm:$0x1] }
 0x204   :  { %823 = vperm.xlu0 %1159, %v820_v43  }
 0x205   :  { %vm560_vm15 = vcmp.gt.f32.partialorder %v536_v42, 0.0  ;;  %v576_v45 = vmul.f32 0.2, %v536_v42  ;;  %v594_v46 = vsel %vm562_vm12, %v544_v38, %v578_v31 }
 0x206   :  { %v602_v51 = vpack.c.bf16 %v594_v46, %v593_v50 }
 0x207   :  { %v592_v48 = vsel %vm560_vm15, %v536_v42, %v576_v45 }
 0x208   :  { %v601_v49 = vpack.c.bf16 %v592_v48, %v591_v47 }
 0x20a   :  { %1110 = vmatprep.mubr.bf16.mxu0 %v601_v49 }
 0x20b   :  { %1111 = vmatmul.mubr.bf16.gmra.mxu0 %v602_v51 }
 0x2b3   :  { %v1431_v54 = vpop.f32.mrf.mxu0 }
 0x2b4   :  { %v717_v44 = vadd.f32 %v1431_v54, %v1446_v4 }
 0x2b5   :  { %v1433_v55 = vpop.f32.mrf.mxu0 }
 0x2b6   :  { %v789_v47 = vmul.f32 0.2, %v717_v44  ;;  %vm773_vm14 = vcmp.gt.f32.partialorder %v717_v44, 0.0  ;;  %v709_v50 = vadd.f32 %v1446_v4, %v1433_v55  ;;  %v826_v55 = vlaneseq }
 0x2b7   :  { %v1435_v56 = vpop.f32.mrf.mxu0 }
 0x2b8   :  { %v720_v41 = vadd.f32 %v1435_v56, %v1446_v4  ;;  %v805_v43 = vsel %vm773_vm14, %v717_v44, %v789_v47  ;;  %v787_v53 = vmul.f32 0.2, %v709_v50  ;;  %vm771_vm0 = vcmp.gt.f32.partialorder %v709_v50, 0.0 }
 0x2b9   :  { %v1437_v57 = vpop.f32.mrf.mxu0 }
 0x2ba   :  { %v790_v45 = vmul.f32 0.2, %v720_v41  ;;  %vm774_vm13 = vcmp.gt.f32.partialorder %v720_v41, 0.0  ;;  %v712_v48 = vadd.f32 %v1446_v4, %v1437_v57  ;;  %v803_v56 = vsel %vm771_vm0, %v709_v50, %v787_v53  ;;  %v819_v57 = vld [vmem:[%s1498_s7] sm:$0x1] }
 0x2bb   :  { %v1104_v58 = vpop.f32.mrf.mxu0 }
 0x2bc   :  { %v733_v32 = vadd.f32 %v1104_v58, %v1446_v4  ;;  %v806_v49 = vsel %vm774_vm13, %v720_v41, %v790_v45  ;;  %v788_v51 = vmul.f32 0.2, %v712_v48  ;;  %vm772_vm15 = vcmp.gt.f32.partialorder %v712_v48, 0.0 }
 0x2bd   :  { %v1439_v59 = vpop.f32.mrf.mxu0  ;;  %v827_v58 = vshrl.u32 %v826_v55, 7 }
 0x2be   :  { %v793_v35 = vmul.f32 0.2, %v733_v32  ;;  %vm777_vm10 = vcmp.gt.f32.partialorder %v733_v32, 0.0  ;;  %v725_v38 = vadd.f32 %v1446_v4, %v1439_v59  ;;  %v804_v54 = vsel %vm772_vm15, %v712_v48, %v788_v51 }
 0x2bf   :  { %v1105_v60 = vpop.f32.mrf.mxu0  ;;  %v828_v59 = vsub.s32 0, %v827_v58 }
 0x2c0   :  { %v736_v28 = vadd.f32 %v1105_v60, %v1446_v4  ;;  %v809_v40 = vsel %vm777_vm10, %v733_v32, %v793_v35  ;;  %v791_v31 = vmul.f32 0.2, %v725_v38  ;;  %vm775_vm12 = vcmp.gt.f32.partialorder %v725_v38, 0.0  ;;  %v824_v60 = vpop.permute.xlu0 %823 }
 0x2c1   :  { %v1441_v61 = vpop.f32.mrf.mxu0 }
 0x2c2   :  { %v794_v33 = vmul.f32 0.2, %v736_v28  ;;  %vm778_vm9 = vcmp.gt.f32.partialorder %v736_v28, 0.0  ;;  %v728_v36 = vadd.f32 %v1446_v4, %v1441_v61  ;;  %v807_v46 = vsel %vm775_vm12, %v725_v38, %v791_v31 }
 0x2c3   :  { %v1108_v62 = vpop.f32.mrf.mxu0  ;;  %v829_v61 = vrot.slane %v824_v60, %v828_v59 }
 0x2c4   :  { %v749_v19 = vadd.f32 %v1108_v62, %v1446_v4  ;;  %v810_v37 = vsel %vm778_vm9, %v736_v28, %v794_v33  ;;  %v792_v39 = vmul.f32 0.2, %v728_v36  ;;  %vm776_vm11 = vcmp.gt.f32.partialorder %v728_v36, 0.0 }
 0x2c5   :  { %v740_v63 = vpop.f32.mrf.mxu0 }
 0x2c6   :  { %v797_v22 = vmul.f32 0.2, %v749_v19  ;;  %vm781_vm6 = vcmp.gt.f32.partialorder %v749_v19, 0.0  ;;  %v741_v25 = vadd.f32 %v1446_v4, %v740_v63  ;;  %v808_v42 = vsel %vm776_vm11, %v728_v36, %v792_v39 }
 0x2c7   :  { %v1109_v0 = vpop.f32.mrf.mxu0 }
 0x2c8   :  { %v752_v16 = vadd.f32 %v1109_v0, %v1446_v4  ;;  %v813_v27 = vsel %vm781_vm6, %v749_v19, %v797_v22  ;;  %v795_v29 = vmul.f32 0.2, %v741_v25  ;;  %vm779_vm8 = vcmp.gt.f32.partialorder %v741_v25, 0.0 }
 0x2c9   :  { %v743_v1 = vpop.f32.mrf.mxu0 }
 0x2ca   :  { %v798_v20 = vmul.f32 0.2, %v752_v16  ;;  %vm782_vm5 = vcmp.gt.f32.partialorder %v752_v16, 0.0  ;;  %v744_v23 = vadd.f32 %v1446_v4, %v743_v1  ;;  %v811_v34 = vsel %vm779_vm8, %v741_v25, %v795_v29 }
 0x2cb   :  { %v1112_v2 = vpop.f32.mrf.mxu0 }
 0x2cc   :  { %v765_v6 = vadd.f32 %v1112_v2, %v1446_v4  ;;  %v814_v24 = vsel %vm782_vm5, %v752_v16, %v798_v20  ;;  %v796_v26 = vmul.f32 0.2, %v744_v23  ;;  %vm780_vm7 = vcmp.gt.f32.partialorder %v744_v23, 0.0 }
 0x2cd   :  { %v756_v3 = vpop.f32.mrf.mxu0 }
 0x2ce   :  { %v801_v10 = vmul.f32 0.2, %v765_v6  ;;  %vm785_vm2 = vcmp.gt.f32.partialorder %v765_v6, 0.0  ;;  %v757_v13 = vadd.f32 %v1446_v4, %v756_v3  ;;  %v812_v30 = vsel %vm780_vm7, %v744_v23, %v796_v26 }
 0x2cf   :  { %v1113_v5 = vpop.f32.mrf.mxu0 }
 0x2d0   :  { %v768_v7 = vadd.f32 %v1113_v5, %v1446_v4  ;;  %v817_v15 = vsel %vm785_vm2, %v765_v6, %v801_v10  ;;  %v799_v17 = vmul.f32 0.2, %v757_v13  ;;  %vm783_vm4 = vcmp.gt.f32.partialorder %v757_v13, 0.0 }
 0x2d1   :  { %v759_v8 = vpop.f32.mrf.mxu0 }
 0x2d2   :  { %vm786_vm1 = vcmp.gt.f32.partialorder %v768_v7, 0.0  ;;  %v802_v9 = vmul.f32 0.2, %v768_v7  ;;  %v760_v11 = vadd.f32 %v1446_v4, %v759_v8  ;;  %v815_v21 = vsel %vm783_vm4, %v757_v13, %v799_v17 }
 0x2d4   :  { %v818_v12 = vsel %vm786_vm1, %v768_v7, %v802_v9  ;;  %v800_v14 = vmul.f32 0.2, %v760_v11  ;;  %vm784_vm3 = vcmp.gt.f32.partialorder %v760_v11, 0.0 }
 0x2d5   :  { %1115 = vmatpush3.xpose.msra.mxu1 %v818_v12 }
 0x2d6   :  { %1116 = vmatprep.subr.mxu1 %v1306_v52  ;;  %v816_v18 = vsel %vm784_vm3, %v760_v11, %v800_v14 }
 0x2d9   :  { %1117 = vmatpush3.xpose.msra.mxu1 %v817_v15 }
 0x2da   :  { %1118 = vmatprep.subr.mxu1 %v1306_v52 }
 0x2dd   :  { %1119 = vmatpush3.xpose.msra.mxu1 %v816_v18 }
 0x2de   :  { %1120 = vmatprep.subr.mxu1 %v1306_v52 }
 0x2e1   :  { %1121 = vmatpush3.xpose.msra.mxu1 %v815_v21 }
 0x2e2   :  { %1122 = vmatprep.subr.mxu1 %v1306_v52 }
 0x2e5   :  { %1123 = vmatpush3.xpose.msra.mxu1 %v814_v24 }
 0x2e6   :  { %1124 = vmatprep.subr.mxu1 %v1306_v52 }
 0x2e9   :  { %1125 = vmatpush3.xpose.msra.mxu1 %v813_v27 }
 0x2ea   :  { %1126 = vmatprep.subr.mxu1 %v1306_v52 }
 0x2ed   :  { %1127 = vmatpush3.xpose.msra.mxu1 %v812_v30 }
 0x2ee   :  { %1128 = vmatprep.subr.mxu1 %v1306_v52 }
 0x2f1   :  { %1129 = vmatpush3.xpose.msra.mxu1 %v811_v34 }
 0x2f2   :  { %1130 = vmatprep.subr.mxu1 %v1306_v52 }
 0x2f5   :  { %1131 = vmatpush3.xpose.msra.mxu1 %v810_v37 }
 0x2f6   :  { %1132 = vmatprep.subr.mxu1 %v1306_v52 }
 0x2f9   :  { %1133 = vmatpush3.xpose.msra.mxu1 %v809_v40 }
 0x2fa   :  { %1134 = vmatprep.subr.mxu1 %v1306_v52 }
 0x2fd   :  { %1135 = vmatpush3.xpose.msra.mxu1 %v808_v42 }
 0x2fe   :  { %1136 = vmatprep.subr.mxu1 %v1306_v52 }
 0x301   :  { %1137 = vmatpush3.xpose.msra.mxu1 %v807_v46 }
 0x302   :  { %1138 = vmatprep.subr.mxu1 %v1306_v52 }
 0x305   :  { %1139 = vmatpush3.xpose.msra.mxu1 %v806_v49 }
 0x306   :  { %1140 = vmatprep.subr.mxu1 %v1306_v52 }
 0x309   :  { %1141 = vmatpush3.xpose.msra.mxu1 %v805_v43 }
 0x30a   :  { %1142 = vmatprep.subr.mxu1 %v1306_v52 }
 0x30d   :  { %1143 = vmatpush3.xpose.msra.mxu1 %v804_v54 }
 0x30e   :  { %1144 = vmatprep.subr.mxu1 %v1306_v52 }
 0x311   :  { %1145 = vmatpush3.xpose.msra.mxu1 %v803_v56 }
 0x314   :  { %1147 = vmatmul.mubr.f32.vlgmr.msra.gmra.mxu1 %v819_v57 }
 0x3d4   :  { %v896_v62 = vpop.f32.mrf.mxu1 }
 0x3d5   :  { %v897_v63 = vadd.f32 %v896_v62, %v829_v61 }
 0x3d6   :  { %v1148_v0 = vpop.f32.mrf.mxu1 }
 0x3d7   :  { %900 = vst [vmem:[#allocation11] sm:$0x1] %v897_v63 }
 0x3d8   :  { %1283 = shalt.err (!%p1280_p10)
}
 0x3d9   :  { %910 = dma.vmem_to_hbm [thread:$0]  %s908_s13, 16, %s1500_s9, [#allocation5]  }
 0x3da   :  { %1298 = dma.done.wait [#allocation5], 16  }
 0x3db   :  { %1299 = vsyncadd [#allocation5], 4294967280 }
 0x3dc   :  { %914 = vsyncpa [#allocation4], 1 }
 0x3dd   :  { %915 = vsyncpa [#allocation7], 1 }
 0x3de   :  { %916 = vsyncpa [#allocation10], 1 }
 0x3df   :  { %917 = vsyncpa [#allocation5], 1 }

// kernel: tpu_custom_call.1
= control target key start
LH: loop header
LB: loop body
LE: loop exit
PB: predicated region body
PF: predicated region fallthrough
CT: control target
= control target key end

     0   :  { %s1491_s0 = inlined_call_operand.hbm [shape: bf16[128,128], index: 0, kind: input, shape index: {}]   ;;  %s1492_s1 = inlined_call_operand.hbm [shape: bf16[128,128], index: 1, kind: input, shape index: {}]   ;;  %s1493_s2 = inlined_call_operand.vmem [shape: f32[1,128], index: 2, kind: input, shape index: {}]   ;;  %s1494_s3 = inlined_call_operand.hbm [shape: bf16[128,128], index: 3, kind: input, shape index: {}]   ;;  %s1495_s4 = inlined_call_operand.vmem [shape: f32[1,128], index: 4, kind: input, shape index: {}]   ;;  %s1496_s5 = inlined_call_operand.hbm [shape: bf16[128,128], index: 5, kind: input, shape index: {}]   ;;  %s1497_s6 = inlined_call_operand.vmem [shape: f32[1,128], index: 6, kind: input, shape index: {}]   ;;  %s1498_s7 = inlined_call_operand.vmem [shape: f32[1,128], index: 7, kind: input, shape index: {}]   ;;  %s1499_s8 = inlined_call_operand.<no memory space> [shape: f32[1,1], index: 8, kind: input, shape index: {}]   ;;  %s1500_s9 = inlined_call_operand.hbm [shape: f32[1,1,128], index: 9, kind: output, shape index: {}]  }
   0x1   :  { %v14_v0 = vstv %s1499_s8 }
   0x2   :  { %15 = vst [vmem:[#allocation2] sm:$0x1] %v14_v0 }
   0x3   :  { %16 = vsyncpa [#allocation4], 0 }
   0x4   :  { %17 = vsyncpa [#allocation7], 0 }
   0x5   :  { %18 = vsyncpa [#allocation10], 0 }
   0x6   :  { %19 = vsyncpa [#allocation5], 0  ;;  %s1300_s11 = smov [#allocation6]   ;;  %s1301_s13 = smov [#allocation3]  }
   0x7   :  { %s37_s12 = sshll.u32 %s1300_s11, 4  ;;  %s25_s14 = sshll.u32 %s1301_s13, 4  ;;  %s38_s12 = int_to_ptr.vmem [resolvable:$true] %s37_s12  ;;  %s26_s14 = int_to_ptr.vmem [resolvable:$true] %s25_s14 }
   0x8   :  { %s1200_s15 = scalar_lea.vmem %s38_s12, 1024  ;;  %p1205_p1 = scmp.lt.s32.totalorder %s38_s12, %s38_s12 }
   0x9   :  { %p1201_p0 = scmp.ne.s32.totalorder %s38_s12, %s1200_s15  ;;  %p1206_p2 = scmp.lt.s32.totalorder %s1200_s15, %s1200_s15 }
   0xb   :  { %p1207_p3 = por %p1206_p2, %p1205_p1 }
   0xd   :  { %p1208_p4 = pnand %p1207_p3, %p1201_p0 }
   0xf   :  { %1211 = shalt.err (!%p1208_p4)
}
  0x10   :  { %s1302_s16 = smov 64   ;;  %s1303_s8 = smov 4  }
  0x11   :  { %43 = dma.hbm_to_vmem [thread:$0]  %s1492_s1, 1024, %s38_s12, [#allocation7], %s1302_s16, %s1302_s16, %s1303_s8  }
  0x12   :  { %s1220_s19 = scalar_lea.vmem %s26_s14, 1024  ;;  %p1225_p6 = scmp.lt.s32.totalorder %s26_s14, %s26_s14 }
  0x13   :  { %p1221_p5 = scmp.ne.s32.totalorder %s26_s14, %s1220_s19  ;;  %p1226_p7 = scmp.lt.s32.totalorder %s1220_s19, %s1220_s19 }
  0x15   :  { %p1227_p8 = por %p1226_p7, %p1225_p6 }
  0x17   :  { %p1228_p9 = pnand %p1227_p8, %p1221_p5 }
  0x19   :  { %1231 = shalt.err (!%p1228_p9)
}
  0x1a   :  { %31 = dma.hbm_to_vmem [thread:$0]  %s1491_s0, 1024, %s26_s14, [#allocation4], %s1302_s16, %s1302_s16, %s1303_s8  }
  0x1b   :  { %s1304_s22 = smov [#allocation8]   ;;  %s1305_s24 = smov [#allocation9]  }
  0x1c   :  { %s51_s23 = sshll.u32 %s1304_s22, 4  ;;  %s65_s25 = sshll.u32 %s1305_s24, 4  ;;  %s52_s23 = int_to_ptr.vmem [resolvable:$true] %s51_s23  ;;  %s66_s25 = int_to_ptr.vmem [resolvable:$true] %s65_s25 }
  0x1d   :  { %s1240_s1 = scalar_lea.vmem %s52_s23, 1024  ;;  %p1245_p11 = scmp.lt.s32.totalorder %s52_s23, %s52_s23 }
  0x1e   :  { %p1241_p10 = scmp.ne.s32.totalorder %s52_s23, %s1240_s1  ;;  %p1246_p12 = scmp.lt.s32.totalorder %s1240_s1, %s1240_s1 }
  0x20   :  { %p1247_p13 = por %p1246_p12, %p1245_p11 }
  0x22   :  { %p1248_p0 = pnand %p1247_p13, %p1241_p10 }
  0x24   :  { %1251 = shalt.err (!%p1248_p0)
}
  0x25   :  { %57 = dma.hbm_to_vmem [thread:$0]  %s1494_s3, 1024, %s52_s23, [#allocation7], %s1302_s16, %s1302_s16, %s1303_s8  }
  0x26   :  { %s1260_s0 = scalar_lea.vmem %s66_s25, 1024  ;;  %p1265_p2 = scmp.lt.s32.totalorder %s66_s25, %s66_s25 }
  0x27   :  { %p1261_p1 = scmp.ne.s32.totalorder %s66_s25, %s1260_s0  ;;  %p1266_p3 = scmp.lt.s32.totalorder %s1260_s0, %s1260_s0 }
  0x29   :  { %p1267_p4 = por %p1266_p3, %p1265_p2 }
  0x2b   :  { %p1268_p5 = pnand %p1267_p4, %p1261_p1 }
  0x2d   :  { %1271 = shalt.err (!%p1268_p5)
}
  0x2e   :  { %71 = dma.hbm_to_vmem [thread:$0]  %s1496_s5, 1024, %s66_s25, [#allocation10], %s1302_s16, %s1302_s16, %s1303_s8  }
  0x2f   :  { %1292 = dma.done.wait [#allocation4], 1024  }
  0x30   :  { %1293 = vsyncadd [#allocation4], 4294966272 }
  0x31   :  { %1294 = dma.done.wait [#allocation7], 2048  }
  0x32   :  { %1295 = vsyncadd [#allocation7], 4294965248 }
  0x33   :  { %1296 = dma.done.wait [#allocation10], 1024  }
  0x34   :  { %1297 = vsyncadd [#allocation10], 4294966272  ;;  %v1160_v1 = vld [vmem:[#allocation6 + $0x38] sm:$0xff]   ;;  %v1161_v2 = vld [vmem:[#allocation6 + $0x30] sm:$0xff]   ;;  %s1309_s12 = smov [#allocation11]  }
  0x35   :  { %1018 = vmatprep.subr.bf16.mxu0 %v1160_v1  ;;  %v1162_v3 = vld [vmem:[#allocation6 + $0x28] sm:$0xff]   ;;  %v1163_v4 = vld [vmem:[#allocation6 + $0x20] sm:$0xff]   ;;  %v1164_v6 = vld [vmem:[#allocation6 + $0x18] sm:$0xff]   ;;  %s907_s13 = sshll.u32 %s1309_s12, 4  ;;  %s908_s13 = int_to_ptr.vmem [resolvable:$true] %s907_s13 }
  0x36   :  { %1019 = vmatpush3.bf16.msra.mxu0 %v1160_v1  ;;  %v1168_v5 = vld [vmem:[#allocation3] sm:$0xff]   ;;  %v1165_v7 = vld [vmem:[#allocation6 + $0x10] sm:$0xff]   ;;  %v1176_v8 = vld [vmem:[#allocation8 + $0x38] sm:$0xff]   ;;  %s1272_s14 = scalar_lea.vmem %s908_s13, 16  ;;  %s1276_s15 = scalar_lea.vmem %s908_s13, 32 }
  0x37   :  { %1020 = vmatprep.subr.bf16.mxu0 %v1161_v2  ;;  %1034 = vmatprep.mubr.bf16.mxu0 %v1168_v5  ;;  %v1177_v9 = vld [vmem:[#allocation8 + $0x30] sm:$0xff]   ;;  %v1166_v10 = vld [vmem:[#allocation6 + $0x8] sm:$0xff]   ;;  %v1167_v12 = vld [vmem:[#allocation6] sm:$0xff]   ;;  %p1273_p6 = scmp.ne.s32.totalorder %s908_s13, %s1272_s14  ;;  %p1277_p7 = scmp.lt.s32.totalorder %s908_s13, %s908_s13 }
  0x38   :  { %1050 = vmatprep.subr.bf16.mxu1 %v1176_v8  ;;  %v1178_v11 = vld [vmem:[#allocation8 + $0x28] sm:$0xff]   ;;  %v1179_v13 = vld [vmem:[#allocation8 + $0x20] sm:$0xff]   ;;  %v1180_v14 = vld [vmem:[#allocation8 + $0x18] sm:$0xff]   ;;  %p1278_p8 = scmp.lt.s32.totalorder %s1276_s15, %s1272_s14 }
  0x39   :  { %1051 = vmatpush3.bf16.msra.mxu1 %v1176_v8  ;;  %v1169_v15 = vld [vmem:[#allocation3 + $0x8] sm:$0xff]   ;;  %v1170_v16 = vld [vmem:[#allocation3 + $0x10] sm:$0xff]   ;;  %v1171_v17 = vld [vmem:[#allocation3 + $0x18] sm:$0xff]  }
  0x3a   :  { %1021 = vmatpush3.bf16.msra.mxu0 %v1161_v2  ;;  %1052 = vmatprep.subr.bf16.mxu1 %v1177_v9  ;;  %v1172_v18 = vld [vmem:[#allocation3 + $0x20] sm:$0xff]   ;;  %v1173_v19 = vld [vmem:[#allocation3 + $0x28] sm:$0xff]   ;;  %v1174_v20 = vld [vmem:[#allocation3 + $0x30] sm:$0xff]   ;;  %p1279_p9 = por %p1278_p8, %p1277_p7 }
  0x3b   :  { %1022 = vmatprep.subr.bf16.mxu0 %v1162_v3  ;;  %v1175_v21 = vld [vmem:[#allocation3 + $0x38] sm:$0xff]   ;;  %v1181_v22 = vld [vmem:[#allocation8 + $0x10] sm:$0xff]   ;;  %v1182_v23 = vld [vmem:[#allocation8 + $0x8] sm:$0xff]  }
  0x3c   :  { %v1183_v24 = vld [vmem:[#allocation8] sm:$0xff]   ;;  %v1184_v25 = vld [vmem:[#allocation9 + $0x38] sm:$0xff]   ;;  %v1185_v26 = vld [vmem:[#allocation9 + $0x30] sm:$0xff]   ;;  %p1280_p10 = pnand %p1279_p9, %p1273_p6 }
  0x3d   :  { %1053 = vmatpush3.bf16.msra.mxu1 %v1177_v9  ;;  %v1186_v27 = vld [vmem:[#allocation9 + $0x28] sm:$0xff]   ;;  %v1187_v28 = vld [vmem:[#allocation9 + $0x20] sm:$0xff]   ;;  %v1188_v29 = vld [vmem:[#allocation9 + $0x18] sm:$0xff]  }
  0x3e   :  { %1023 = vmatpush3.bf16.msra.mxu0 %v1162_v3  ;;  %1054 = vmatprep.subr.bf16.mxu1 %v1178_v11  ;;  %v1390_v31 = vld [vmem:[%s1493_s2] ss:$0 sm:$0xff] }
  0x3f   :  { %1024 = vmatprep.subr.bf16.mxu0 %v1163_v4 }
  0x41   :  { %1055 = vmatpush3.bf16.msra.mxu1 %v1178_v11 }
  0x42   :  { %1025 = vmatpush3.bf16.msra.mxu0 %v1163_v4  ;;  %1056 = vmatprep.subr.bf16.mxu1 %v1179_v13 }
  0x43   :  { %1026 = vmatprep.subr.bf16.mxu0 %v1164_v6 }
  0x45   :  { %1057 = vmatpush3.bf16.msra.mxu1 %v1179_v13 }
  0x46   :  { %1027 = vmatpush3.bf16.msra.mxu0 %v1164_v6  ;;  %1058 = vmatprep.subr.bf16.mxu1 %v1180_v14 }
  0x47   :  { %1028 = vmatprep.subr.bf16.mxu0 %v1165_v7 }
  0x49   :  { %1059 = vmatpush3.bf16.msra.mxu1 %v1180_v14 }
  0x4a   :  { %1029 = vmatpush3.bf16.msra.mxu0 %v1165_v7  ;;  %1060 = vmatprep.subr.bf16.mxu1 %v1181_v22 }
  0x4b   :  { %1030 = vmatprep.subr.bf16.mxu0 %v1166_v10 }
  0x4d   :  { %1061 = vmatpush3.bf16.msra.mxu1 %v1181_v22 }
  0x4e   :  { %1031 = vmatpush3.bf16.msra.mxu0 %v1166_v10  ;;  %1062 = vmatprep.subr.bf16.mxu1 %v1182_v23 }
  0x4f   :  { %1032 = vmatprep.subr.bf16.mxu0 %v1167_v12 }
  0x51   :  { %1063 = vmatpush3.bf16.msra.mxu1 %v1182_v23 }
  0x52   :  { %1033 = vmatpush3.bf16.msra.mxu0 %v1167_v12  ;;  %1064 = vmatprep.subr.bf16.mxu1 %v1183_v24 }
  0x53   :  { %1082 = vmatprep.subr.bf16.mxu0 %v1184_v25 }
  0x55   :  { %1035 = vmatmul.mubr.bf16.vlgmr.msra.gmra.mxu0 %v1169_v15  ;;  %1065 = vmatpush3.bf16.msra.mxu1 %v1183_v24 }
  0x56   :  { %1038 = vmatprep.mubr.bf16.mxu0 %v1170_v16  ;;  %1083 = vmatpush3.bf16.msra.mxu0 %v1184_v25 }
  0x57   :  { %1084 = vmatprep.subr.bf16.mxu0 %v1185_v26 }
  0x5a   :  { %1085 = vmatpush3.bf16.msra.mxu0 %v1185_v26 }
  0x5b   :  { %1086 = vmatprep.subr.bf16.mxu0 %v1186_v27 }
  0x5d   :  { %1039 = vmatmul.mubr.bf16.gmra.mxu0 %v1171_v17 }
  0x5e   :  { %1042 = vmatprep.mubr.bf16.mxu0 %v1172_v18  ;;  %1087 = vmatpush3.bf16.msra.mxu0 %v1186_v27 }
  0x5f   :  { %1088 = vmatprep.subr.bf16.mxu0 %v1187_v28 }
  0x62   :  { %1089 = vmatpush3.bf16.msra.mxu0 %v1187_v28 }
  0x63   :  { %1090 = vmatprep.subr.bf16.mxu0 %v1188_v29 }
  0x65   :  { %1043 = vmatmul.mubr.bf16.gmra.mxu0 %v1173_v19 }
  0x66   :  { %1046 = vmatprep.mubr.bf16.mxu0 %v1174_v20  ;;  %1091 = vmatpush3.bf16.msra.mxu0 %v1188_v29 }
  0x6d   :  { %1047 = vmatmul.mubr.bf16.gmra.mxu0 %v1175_v21 }
 0x115   :  { %v1036_v30 = vpop.f32.mrf.mxu0 }
 0x116   :  { %v269_v34 = vadd.f32 %v1036_v30, %v1390_v31 }
 0x117   :  { %v260_v32 = vpop.f32.mrf.mxu0 }
 0x118   :  { %v261_v33 = vadd.f32 %v1390_v31, %v260_v32  ;;  %v341_v41 = vmul.f32 0.2, %v269_v34  ;;  %vm325_vm2 = vcmp.gt.f32.partialorder %v269_v34, 0.0 }
 0x119   :  { %v1037_v35 = vpop.f32.mrf.mxu0 }
 0x11a   :  { %v272_v36 = vadd.f32 %v1037_v35, %v1390_v31  ;;  %v339_v38 = vmul.f32 0.2, %v261_v33  ;;  %vm323_vm1 = vcmp.gt.f32.partialorder %v261_v33, 0.0  ;;  %v357_v52 = vsel %vm325_vm2, %v269_v34, %v341_v41  ;;  %v1190_v41 = vld [vmem:[#allocation9 + $0x8] sm:$0xff]  }
 0x11b   :  { %v263_v37 = vpop.f32.mrf.mxu0 }
 0x11c   :  { %vm326_vm0 = vcmp.gt.f32.partialorder %v272_v36, 0.0  ;;  %v342_v39 = vmul.f32 0.2, %v272_v36  ;;  %v264_v40 = vadd.f32 %v1390_v31, %v263_v37  ;;  %v355_v47 = vsel %vm323_vm1, %v261_v33, %v339_v38 }
 0x11d   :  { %v1040_v42 = vpop.f32.mrf.mxu0 }
 0x11e   :  { %v340_v43 = vmul.f32 0.2, %v264_v40  ;;  %vm324_vm3 = vcmp.gt.f32.partialorder %v264_v40, 0.0  ;;  %v358_v45 = vsel %vm326_vm0, %v272_v36, %v342_v39  ;;  %v285_v49 = vadd.f32 %v1040_v42, %v1390_v31 }
 0x11f   :  { %v276_v44 = vpop.f32.mrf.mxu0  ;;  %v372_v54 = vpack.c.bf16 %v358_v45, %v357_v52 }
 0x120   :  { %v277_v46 = vadd.f32 %v1390_v31, %v276_v44  ;;  %v356_v48 = vsel %vm324_vm3, %v264_v40, %v340_v43  ;;  %v345_v59 = vmul.f32 0.2, %v285_v49  ;;  %vm329_vm6 = vcmp.gt.f32.partialorder %v285_v49, 0.0  ;;  %v1189_v40 = vld [vmem:[#allocation9 + $0x10] sm:$0xff]   ;;  %v1411_v43 = vld [vmem:[%s1495_s4] ss:$0 sm:$0xff] }
 0x121   :  { %v1041_v50 = vpop.f32.mrf.mxu0  ;;  %v371_v51 = vpack.c.bf16 %v356_v48, %v355_v47  ;;  %1092 = vmatprep.subr.bf16.mxu0 %v1189_v40 }
 0x122   :  { %v288_v53 = vadd.f32 %v1041_v50, %v1390_v31  ;;  %v343_v56 = vmul.f32 0.2, %v277_v46  ;;  %vm327_vm5 = vcmp.gt.f32.partialorder %v277_v46, 0.0  ;;  %v361_v6 = vsel %vm329_vm6, %v285_v49, %v345_v59  ;;  %1093 = vmatpush3.bf16.msra.mxu0 %v1189_v40 }
 0x123   :  { %v279_v55 = vpop.f32.mrf.mxu0  ;;  %1066 = vmatprep.mubr.bf16.mxu1 %v371_v51  ;;  %1094 = vmatprep.subr.bf16.mxu0 %v1190_v41 }
 0x124   :  { %vm330_vm4 = vcmp.gt.f32.partialorder %v288_v53, 0.0  ;;  %v346_v57 = vmul.f32 0.2, %v288_v53  ;;  %v280_v58 = vadd.f32 %v1390_v31, %v279_v55  ;;  %1067 = vmatmul.mubr.bf16.vlgmr.msra.gmra.mxu1 %v372_v54  ;;  %v359_v1 = vsel %vm327_vm5, %v277_v46, %v343_v56 }
 0x125   :  { %v1044_v60 = vpop.f32.mrf.mxu0 }
 0x126   :  { %vm328_vm7 = vcmp.gt.f32.partialorder %v280_v58, 0.0  ;;  %v344_v61 = vmul.f32 0.2, %v280_v58  ;;  %v362_v63 = vsel %vm330_vm4, %v288_v53, %v346_v57  ;;  %v301_v3 = vadd.f32 %v1044_v60, %v1390_v31  ;;  %1095 = vmatpush3.bf16.msra.mxu0 %v1190_v41 }
 0x127   :  { %v292_v62 = vpop.f32.mrf.mxu0  ;;  %v374_v8 = vpack.c.bf16 %v362_v63, %v361_v6 }
 0x128   :  { %v293_v0 = vadd.f32 %v1390_v31, %v292_v62  ;;  %v360_v2 = vsel %vm328_vm7, %v280_v58, %v344_v61  ;;  %v349_v13 = vmul.f32 0.2, %v301_v3  ;;  %vm333_vm10 = vcmp.gt.f32.partialorder %v301_v3, 0.0 }
 0x129   :  { %v1045_v4 = vpop.f32.mrf.mxu0  ;;  %v373_v5 = vpack.c.bf16 %v360_v2, %v359_v1 }
 0x12a   :  { %v304_v7 = vadd.f32 %v1045_v4, %v1390_v31  ;;  %v347_v10 = vmul.f32 0.2, %v293_v0  ;;  %vm331_vm9 = vcmp.gt.f32.partialorder %v293_v0, 0.0  ;;  %v365_v24 = vsel %vm333_vm10, %v301_v3, %v349_v13 }
 0x12b   :  { %v295_v9 = vpop.f32.mrf.mxu0  ;;  %1070 = vmatprep.mubr.bf16.mxu1 %v373_v5 }
 0x12c   :  { %vm334_vm8 = vcmp.gt.f32.partialorder %v304_v7, 0.0  ;;  %v350_v11 = vmul.f32 0.2, %v304_v7  ;;  %v296_v12 = vadd.f32 %v1390_v31, %v295_v9  ;;  %1071 = vmatmul.mubr.bf16.gmra.mxu1 %v374_v8  ;;  %v363_v19 = vsel %vm331_vm9, %v293_v0, %v347_v10 }
 0x12d   :  { %v1048_v14 = vpop.f32.mrf.mxu0 }
 0x12e   :  { %vm332_vm11 = vcmp.gt.f32.partialorder %v296_v12, 0.0  ;;  %v348_v15 = vmul.f32 0.2, %v296_v12  ;;  %v366_v17 = vsel %vm334_vm8, %v304_v7, %v350_v11  ;;  %v317_v21 = vadd.f32 %v1048_v14, %v1390_v31 }
 0x12f   :  { %v308_v16 = vpop.f32.mrf.mxu0  ;;  %v376_v26 = vpack.c.bf16 %v366_v17, %v365_v24 }
 0x130   :  { %v309_v18 = vadd.f32 %v1390_v31, %v308_v16  ;;  %v364_v20 = vsel %vm332_vm11, %v296_v12, %v348_v15  ;;  %v353_v32 = vmul.f32 0.2, %v317_v21  ;;  %vm337_vm14 = vcmp.gt.f32.partialorder %v317_v21, 0.0 }
 0x131   :  { %v1049_v22 = vpop.f32.mrf.mxu0  ;;  %v375_v23 = vpack.c.bf16 %v364_v20, %v363_v19 }
 0x132   :  { %v320_v25 = vadd.f32 %v1049_v22, %v1390_v31  ;;  %v351_v28 = vmul.f32 0.2, %v309_v18  ;;  %vm335_vm13 = vcmp.gt.f32.partialorder %v309_v18, 0.0  ;;  %v369_v38 = vsel %vm337_vm14, %v317_v21, %v353_v32 }
 0x133   :  { %v311_v27 = vpop.f32.mrf.mxu0  ;;  %1074 = vmatprep.mubr.bf16.mxu1 %v375_v23 }
 0x134   :  { %vm338_vm12 = vcmp.gt.f32.partialorder %v320_v25, 0.0  ;;  %v354_v29 = vmul.f32 0.2, %v320_v25  ;;  %v312_v30 = vadd.f32 %v1390_v31, %v311_v27  ;;  %1075 = vmatmul.mubr.bf16.gmra.mxu1 %v376_v26  ;;  %v367_v35 = vsel %vm335_vm13, %v309_v18, %v351_v28  ;;  %v1191_v31 = vld [vmem:[#allocation9] sm:$0xff]  }
 0x135   :  { %1096 = vmatprep.subr.bf16.mxu0 %v1191_v31 }
 0x136   :  { %vm336_vm15 = vcmp.gt.f32.partialorder %v312_v30, 0.0  ;;  %v352_v33 = vmul.f32 0.2, %v312_v30  ;;  %v370_v34 = vsel %vm338_vm12, %v320_v25, %v354_v29  ;;  %1097 = vmatpush3.bf16.msra.mxu0 %v1191_v31 }
 0x137   :  { %v378_v39 = vpack.c.bf16 %v370_v34, %v369_v38 }
 0x138   :  { %v368_v36 = vsel %vm336_vm15, %v312_v30, %v352_v33 }
 0x139   :  { %v377_v37 = vpack.c.bf16 %v368_v36, %v367_v35 }
 0x13b   :  { %1078 = vmatprep.mubr.bf16.mxu1 %v377_v37 }
 0x13c   :  { %1079 = vmatmul.mubr.bf16.gmra.mxu1 %v378_v39 }
 0x1e4   :  { %v1068_v42 = vpop.f32.mrf.mxu1 }
 0x1e5   :  { %v493_v46 = vadd.f32 %v1068_v42, %v1411_v43 }
 0x1e6   :  { %v484_v44 = vpop.f32.mrf.mxu1 }
 0x1e7   :  { %v485_v45 = vadd.f32 %v1411_v43, %v484_v44  ;;  %v565_v53 = vmul.f32 0.2, %v493_v46  ;;  %vm549_vm2 = vcmp.gt.f32.partialorder %v493_v46, 0.0 }
 0x1e8   :  { %v1069_v47 = vpop.f32.mrf.mxu1 }
 0x1e9   :  { %v496_v48 = vadd.f32 %v1069_v47, %v1411_v43  ;;  %v563_v50 = vmul.f32 0.2, %v485_v45  ;;  %vm547_vm1 = vcmp.gt.f32.partialorder %v485_v45, 0.0  ;;  %v581_v61 = vsel %vm549_vm2, %v493_v46, %v565_v53 }
 0x1ea   :  { %v487_v49 = vpop.f32.mrf.mxu1  ;;  %v1308_v53 = vmov 0  }
 0x1eb   :  { %vm550_vm0 = vcmp.gt.f32.partialorder %v496_v48, 0.0  ;;  %v566_v51 = vmul.f32 0.2, %v496_v48  ;;  %v488_v52 = vadd.f32 %v1411_v43, %v487_v49  ;;  %v579_v59 = vsel %vm547_vm1, %v485_v45, %v563_v50  ;;  %1159 = vset.pattern.permute.xlu0 %v1308_v53 }
 0x1ec   :  { %v1072_v54 = vpop.f32.mrf.mxu1 }
 0x1ed   :  { %vm548_vm3 = vcmp.gt.f32.partialorder %v488_v52, 0.0  ;;  %v564_v55 = vmul.f32 0.2, %v488_v52  ;;  %v582_v56 = vsel %vm550_vm0, %v496_v48, %v566_v51  ;;  %v509_v62 = vadd.f32 %v1072_v54, %v1411_v43 }
 0x1ee   :  { %v500_v57 = vpop.f32.mrf.mxu1  ;;  %v596_v1 = vpack.c.bf16 %v582_v56, %v581_v61  ;;  %vm1307_vm0 = vmmov 0  }
 0x1ef   :  { %v501_v58 = vadd.f32 %v1411_v43, %v500_v57  ;;  %v580_v60 = vsel %vm548_vm3, %v488_v52, %v564_v55  ;;  %v569_v7 = vmul.f32 0.2, %v509_v62  ;;  %vm553_vm6 = vcmp.gt.f32.partialorder %v509_v62, 0.0 }
 0x1f0   :  { %v1073_v63 = vpop.f32.mrf.mxu1  ;;  %v595_v0 = vpack.c.bf16 %v580_v60, %v579_v59  ;;  %v1306_v52 = vmov 0.0  }
 0x1f1   :  { %v512_v2 = vadd.f32 %v1073_v63, %v1411_v43  ;;  %v567_v4 = vmul.f32 0.2, %v501_v58  ;;  %vm551_vm5 = vcmp.gt.f32.partialorder %v501_v58, 0.0  ;;  %v585_v18 = vsel %vm553_vm6, %v509_v62, %v569_v7  ;;  %1114 = vmatprep.subr.mxu1 %v1306_v52  ;;  %1146 = vmatprep.mubr.msk.f32.mxu1 %vm1307_vm0, %v1306_v52 }
 0x1f2   :  { %v503_v3 = vpop.f32.mrf.mxu1  ;;  %1098 = vmatprep.mubr.bf16.mxu0 %v595_v0 }
 0x1f3   :  { %vm554_vm4 = vcmp.gt.f32.partialorder %v512_v2, 0.0  ;;  %v570_v5 = vmul.f32 0.2, %v512_v2  ;;  %v504_v6 = vadd.f32 %v1411_v43, %v503_v3  ;;  %1099 = vmatmul.mubr.bf16.vlgmr.msra.gmra.mxu0 %v596_v1  ;;  %v583_v13 = vsel %vm551_vm5, %v501_v58, %v567_v4  ;;  %v1446_v4 = vld [vmem:[%s1497_s6] ss:$0 sm:$0xff] }
 0x1f4   :  { %v1076_v8 = vpop.f32.mrf.mxu1 }
 0x1f5   :  { %vm552_vm7 = vcmp.gt.f32.partialorder %v504_v6, 0.0  ;;  %v568_v9 = vmul.f32 0.2, %v504_v6  ;;  %v586_v11 = vsel %vm554_vm4, %v512_v2, %v570_v5  ;;  %v525_v15 = vadd.f32 %v1076_v8, %v1411_v43 }
 0x1f6   :  { %v516_v10 = vpop.f32.mrf.mxu1  ;;  %v598_v20 = vpack.c.bf16 %v586_v11, %v585_v18 }
 0x1f7   :  { %v517_v12 = vadd.f32 %v1411_v43, %v516_v10  ;;  %v584_v14 = vsel %vm552_vm7, %v504_v6, %v568_v9  ;;  %v573_v25 = vmul.f32 0.2, %v525_v15  ;;  %vm557_vm10 = vcmp.gt.f32.partialorder %v525_v15, 0.0 }
 0x1f8   :  { %v1077_v16 = vpop.f32.mrf.mxu1  ;;  %v597_v17 = vpack.c.bf16 %v584_v14, %v583_v13 }
 0x1f9   :  { %v528_v19 = vadd.f32 %v1077_v16, %v1411_v43  ;;  %v571_v22 = vmul.f32 0.2, %v517_v12  ;;  %vm555_vm9 = vcmp.gt.f32.partialorder %v517_v12, 0.0  ;;  %v589_v37 = vsel %vm557_vm10, %v525_v15, %v573_v25 }
 0x1fa   :  { %v519_v21 = vpop.f32.mrf.mxu1  ;;  %1102 = vmatprep.mubr.bf16.mxu0 %v597_v17 }
 0x1fb   :  { %vm558_vm8 = vcmp.gt.f32.partialorder %v528_v19, 0.0  ;;  %v574_v23 = vmul.f32 0.2, %v528_v19  ;;  %v520_v24 = vadd.f32 %v1411_v43, %v519_v21  ;;  %1103 = vmatmul.mubr.bf16.gmra.mxu0 %v598_v20  ;;  %v587_v32 = vsel %vm555_vm9, %v517_v12, %v571_v22 }
 0x1fc   :  { %v1080_v26 = vpop.f32.mrf.mxu1 }
 0x1fd   :  { %vm556_vm11 = vcmp.gt.f32.partialorder %v520_v24, 0.0  ;;  %v572_v27 = vmul.f32 0.2, %v520_v24  ;;  %v590_v29 = vsel %vm558_vm8, %v528_v19, %v574_v23  ;;  %v541_v34 = vadd.f32 %v1080_v26, %v1411_v43 }
 0x1fe   :  { %v532_v28 = vpop.f32.mrf.mxu1  ;;  %v600_v39 = vpack.c.bf16 %v590_v29, %v589_v37 }
 0x1ff   :  { %v533_v30 = vadd.f32 %v1411_v43, %v532_v28  ;;  %v588_v33 = vsel %vm556_vm11, %v520_v24, %v572_v27  ;;  %v577_v44 = vmul.f32 0.2, %v541_v34  ;;  %vm561_vm14 = vcmp.gt.f32.partialorder %v541_v34, 0.0 }
 0x200   :  { %v1081_v35 = vpop.f32.mrf.mxu1  ;;  %v599_v36 = vpack.c.bf16 %v588_v33, %v587_v32 }
 0x201   :  { %v544_v38 = vadd.f32 %v1081_v35, %v1411_v43  ;;  %v575_v41 = vmul.f32 0.2, %v533_v30  ;;  %vm559_vm13 = vcmp.gt.f32.partialorder %v533_v30, 0.0  ;;  %v593_v50 = vsel %vm561_vm14, %v541_v34, %v577_v44 }
 0x202   :  { %v535_v40 = vpop.f32.mrf.mxu1  ;;  %1106 = vmatprep.mubr.bf16.mxu0 %v599_v36 }
 0x203   :  { %vm562_vm12 = vcmp.gt.f32.partialorder %v544_v38, 0.0  ;;  %v578_v31 = vmul.f32 0.2, %v544_v38  ;;  %v536_v42 = vadd.f32 %v1411_v43, %v535_v40  ;;  %1107 = vmatmul.mubr.bf16.gmra.mxu0 %v600_v39  ;;  %v591_v47 = vsel %vm559_vm13, %v533_v30, %v575_v41  ;;  %v820_v43 = vld [vmem:[#allocation2] sm:$0x1] }
 0x204   :  { %823 = vperm.xlu0 %1159, %v820_v43  }
 0x205   :  { %vm560_vm15 = vcmp.gt.f32.partialorder %v536_v42, 0.0  ;;  %v576_v45 = vmul.f32 0.2, %v536_v42  ;;  %v594_v46 = vsel %vm562_vm12, %v544_v38, %v578_v31 }
 0x206   :  { %v602_v51 = vpack.c.bf16 %v594_v46, %v593_v50 }
 0x207   :  { %v592_v48 = vsel %vm560_vm15, %v536_v42, %v576_v45 }
 0x208   :  { %v601_v49 = vpack.c.bf16 %v592_v48, %v591_v47 }
 0x20a   :  { %1110 = vmatprep.mubr.bf16.mxu0 %v601_v49 }
 0x20b   :  { %1111 = vmatmul.mubr.bf16.gmra.mxu0 %v602_v51 }
 0x2b3   :  { %v1431_v54 = vpop.f32.mrf.mxu0 }
 0x2b4   :  { %v717_v44 = vadd.f32 %v1431_v54, %v1446_v4 }
 0x2b5   :  { %v1433_v55 = vpop.f32.mrf.mxu0 }
 0x2b6   :  { %v789_v47 = vmul.f32 0.2, %v717_v44  ;;  %vm773_vm14 = vcmp.gt.f32.partialorder %v717_v44, 0.0  ;;  %v709_v50 = vadd.f32 %v1446_v4, %v1433_v55  ;;  %v826_v55 = vlaneseq }
 0x2b7   :  { %v1435_v56 = vpop.f32.mrf.mxu0 }
 0x2b8   :  { %v720_v41 = vadd.f32 %v1435_v56, %v1446_v4  ;;  %v805_v43 = vsel %vm773_vm14, %v717_v44, %v789_v47  ;;  %v787_v53 = vmul.f32 0.2, %v709_v50  ;;  %vm771_vm0 = vcmp.gt.f32.partialorder %v709_v50, 0.0 }
 0x2b9   :  { %v1437_v57 = vpop.f32.mrf.mxu0 }
 0x2ba   :  { %v790_v45 = vmul.f32 0.2, %v720_v41  ;;  %vm774_vm13 = vcmp.gt.f32.partialorder %v720_v41, 0.0  ;;  %v712_v48 = vadd.f32 %v1446_v4, %v1437_v57  ;;  %v803_v56 = vsel %vm771_vm0, %v709_v50, %v787_v53  ;;  %v819_v57 = vld [vmem:[%s1498_s7] sm:$0x1] }
 0x2bb   :  { %v1104_v58 = vpop.f32.mrf.mxu0 }
 0x2bc   :  { %v733_v32 = vadd.f32 %v1104_v58, %v1446_v4  ;;  %v806_v49 = vsel %vm774_vm13, %v720_v41, %v790_v45  ;;  %v788_v51 = vmul.f32 0.2, %v712_v48  ;;  %vm772_vm15 = vcmp.gt.f32.partialorder %v712_v48, 0.0 }
 0x2bd   :  { %v1439_v59 = vpop.f32.mrf.mxu0  ;;  %v827_v58 = vshrl.u32 %v826_v55, 7 }
 0x2be   :  { %v793_v35 = vmul.f32 0.2, %v733_v32  ;;  %vm777_vm10 = vcmp.gt.f32.partialorder %v733_v32, 0.0  ;;  %v725_v38 = vadd.f32 %v1446_v4, %v1439_v59  ;;  %v804_v54 = vsel %vm772_vm15, %v712_v48, %v788_v51 }
 0x2bf   :  { %v1105_v60 = vpop.f32.mrf.mxu0  ;;  %v828_v59 = vsub.s32 0, %v827_v58 }
 0x2c0   :  { %v736_v28 = vadd.f32 %v1105_v60, %v1446_v4  ;;  %v809_v40 = vsel %vm777_vm10, %v733_v32, %v793_v35  ;;  %v791_v31 = vmul.f32 0.2, %v725_v38  ;;  %vm775_vm12 = vcmp.gt.f32.partialorder %v725_v38, 0.0  ;;  %v824_v60 = vpop.permute.xlu0 %823 }
 0x2c1   :  { %v1441_v61 = vpop.f32.mrf.mxu0 }
 0x2c2   :  { %v794_v33 = vmul.f32 0.2, %v736_v28  ;;  %vm778_vm9 = vcmp.gt.f32.partialorder %v736_v28, 0.0  ;;  %v728_v36 = vadd.f32 %v1446_v4, %v1441_v61  ;;  %v807_v46 = vsel %vm775_vm12, %v725_v38, %v791_v31 }
 0x2c3   :  { %v1108_v62 = vpop.f32.mrf.mxu0  ;;  %v829_v61 = vrot.slane %v824_v60, %v828_v59 }
 0x2c4   :  { %v749_v19 = vadd.f32 %v1108_v62, %v1446_v4  ;;  %v810_v37 = vsel %vm778_vm9, %v736_v28, %v794_v33  ;;  %v792_v39 = vmul.f32 0.2, %v728_v36  ;;  %vm776_vm11 = vcmp.gt.f32.partialorder %v728_v36, 0.0 }
 0x2c5   :  { %v740_v63 = vpop.f32.mrf.mxu0 }
 0x2c6   :  { %v797_v22 = vmul.f32 0.2, %v749_v19  ;;  %vm781_vm6 = vcmp.gt.f32.partialorder %v749_v19, 0.0  ;;  %v741_v25 = vadd.f32 %v1446_v4, %v740_v63  ;;  %v808_v42 = vsel %vm776_vm11, %v728_v36, %v792_v39 }
 0x2c7   :  { %v1109_v0 = vpop.f32.mrf.mxu0 }
 0x2c8   :  { %v752_v16 = vadd.f32 %v1109_v0, %v1446_v4  ;;  %v813_v27 = vsel %vm781_vm6, %v749_v19, %v797_v22  ;;  %v795_v29 = vmul.f32 0.2, %v741_v25  ;;  %vm779_vm8 = vcmp.gt.f32.partialorder %v741_v25, 0.0 }
 0x2c9   :  { %v743_v1 = vpop.f32.mrf.mxu0 }
 0x2ca   :  { %v798_v20 = vmul.f32 0.2, %v752_v16  ;;  %vm782_vm5 = vcmp.gt.f32.partialorder %v752_v16, 0.0  ;;  %v744_v23 = vadd.f32 %v1446_v4, %v743_v1  ;;  %v811_v34 = vsel %vm779_vm8, %v741_v25, %v795_v29 }
 0x2cb   :  { %v1112_v2 = vpop.f32.mrf.mxu0 }
 0x2cc   :  { %v765_v6 = vadd.f32 %v1112_v2, %v1446_v4  ;;  %v814_v24 = vsel %vm782_vm5, %v752_v16, %v798_v20  ;;  %v796_v26 = vmul.f32 0.2, %v744_v23  ;;  %vm780_vm7 = vcmp.gt.f32.partialorder %v744_v23, 0.0 }
 0x2cd   :  { %v756_v3 = vpop.f32.mrf.mxu0 }
 0x2ce   :  { %v801_v10 = vmul.f32 0.2, %v765_v6  ;;  %vm785_vm2 = vcmp.gt.f32.partialorder %v765_v6, 0.0  ;;  %v757_v13 = vadd.f32 %v1446_v4, %v756_v3  ;;  %v812_v30 = vsel %vm780_vm7, %v744_v23, %v796_v26 }
 0x2cf   :  { %v1113_v5 = vpop.f32.mrf.mxu0 }
 0x2d0   :  { %v768_v7 = vadd.f32 %v1113_v5, %v1446_v4  ;;  %v817_v15 = vsel %vm785_vm2, %v765_v6, %v801_v10  ;;  %v799_v17 = vmul.f32 0.2, %v757_v13  ;;  %vm783_vm4 = vcmp.gt.f32.partialorder %v757_v13, 0.0 }
 0x2d1   :  { %v759_v8 = vpop.f32.mrf.mxu0 }
 0x2d2   :  { %vm786_vm1 = vcmp.gt.f32.partialorder %v768_v7, 0.0  ;;  %v802_v9 = vmul.f32 0.2, %v768_v7  ;;  %v760_v11 = vadd.f32 %v1446_v4, %v759_v8  ;;  %v815_v21 = vsel %vm783_vm4, %v757_v13, %v799_v17 }
 0x2d4   :  { %v818_v12 = vsel %vm786_vm1, %v768_v7, %v802_v9  ;;  %v800_v14 = vmul.f32 0.2, %v760_v11  ;;  %vm784_vm3 = vcmp.gt.f32.partialorder %v760_v11, 0.0 }
 0x2d5   :  { %1115 = vmatpush3.xpose.msra.mxu1 %v818_v12 }
 0x2d6   :  { %1116 = vmatprep.subr.mxu1 %v1306_v52  ;;  %v816_v18 = vsel %vm784_vm3, %v760_v11, %v800_v14 }
 0x2d9   :  { %1117 = vmatpush3.xpose.msra.mxu1 %v817_v15 }
 0x2da   :  { %1118 = vmatprep.subr.mxu1 %v1306_v52 }
 0x2dd   :  { %1119 = vmatpush3.xpose.msra.mxu1 %v816_v18 }
 0x2de   :  { %1120 = vmatprep.subr.mxu1 %v1306_v52 }
 0x2e1   :  { %1121 = vmatpush3.xpose.msra.mxu1 %v815_v21 }
 0x2e2   :  { %1122 = vmatprep.subr.mxu1 %v1306_v52 }
 0x2e5   :  { %1123 = vmatpush3.xpose.msra.mxu1 %v814_v24 }
 0x2e6   :  { %1124 = vmatprep.subr.mxu1 %v1306_v52 }
 0x2e9   :  { %1125 = vmatpush3.xpose.msra.mxu1 %v813_v27 }
 0x2ea   :  { %1126 = vmatprep.subr.mxu1 %v1306_v52 }
 0x2ed   :  { %1127 = vmatpush3.xpose.msra.mxu1 %v812_v30 }
 0x2ee   :  { %1128 = vmatprep.subr.mxu1 %v1306_v52 }
 0x2f1   :  { %1129 = vmatpush3.xpose.msra.mxu1 %v811_v34 }
 0x2f2   :  { %1130 = vmatprep.subr.mxu1 %v1306_v52 }
 0x2f5   :  { %1131 = vmatpush3.xpose.msra.mxu1 %v810_v37 }
 0x2f6   :  { %1132 = vmatprep.subr.mxu1 %v1306_v52 }
 0x2f9   :  { %1133 = vmatpush3.xpose.msra.mxu1 %v809_v40 }
 0x2fa   :  { %1134 = vmatprep.subr.mxu1 %v1306_v52 }
 0x2fd   :  { %1135 = vmatpush3.xpose.msra.mxu1 %v808_v42 }
 0x2fe   :  { %1136 = vmatprep.subr.mxu1 %v1306_v52 }
 0x301   :  { %1137 = vmatpush3.xpose.msra.mxu1 %v807_v46 }
 0x302   :  { %1138 = vmatprep.subr.mxu1 %v1306_v52 }
 0x305   :  { %1139 = vmatpush3.xpose.msra.mxu1 %v806_v49 }
 0x306   :  { %1140 = vmatprep.subr.mxu1 %v1306_v52 }
 0x309   :  { %1141 = vmatpush3.xpose.msra.mxu1 %v805_v43 }
 0x30a   :  { %1142 = vmatprep.subr.mxu1 %v1306_v52 }
 0x30d   :  { %1143 = vmatpush3.xpose.msra.mxu1 %v804_v54 }
 0x30e   :  { %1144 = vmatprep.subr.mxu1 %v1306_v52 }
 0x311   :  { %1145 = vmatpush3.xpose.msra.mxu1 %v803_v56 }
 0x314   :  { %1147 = vmatmul.mubr.f32.vlgmr.msra.gmra.mxu1 %v819_v57 }
 0x3d4   :  { %v896_v62 = vpop.f32.mrf.mxu1 }
 0x3d5   :  { %v897_v63 = vadd.f32 %v896_v62, %v829_v61 }
 0x3d6   :  { %v1148_v0 = vpop.f32.mrf.mxu1 }
 0x3d7   :  { %900 = vst [vmem:[#allocation11] sm:$0x1] %v897_v63 }
 0x3d8   :  { %1283 = shalt.err (!%p1280_p10)
}
 0x3d9   :  { %910 = dma.vmem_to_hbm [thread:$0]  %s908_s13, 16, %s1500_s9, [#allocation5]  }
 0x3da   :  { %1298 = dma.done.wait [#allocation5], 16  }
 0x3db   :  { %1299 = vsyncadd [#allocation5], 4294967280 }
 0x3dc   :  { %914 = vsyncpa [#allocation4], 1 }
 0x3dd   :  { %915 = vsyncpa [#allocation7], 1 }
 0x3de   :  { %916 = vsyncpa [#allocation10], 1 }
 0x3df   :  { %917 = vsyncpa [#allocation5], 1 }

</bundles_post_ra>
